<compile_context>
chip_gen: v6e
topology: v6e:2x2x1
jax: 0.10.0
libtpu: 0.0.40
codegen_flags: <defaults>
</compile_context>

<pallas_src>
import jax
import jax.numpy as jnp
from jax.experimental import pallas as pl
from jax.experimental.pallas import tpu as pltpu

EPS_REEIG = 1e-4


# ----------------------------- encoder BiMap kernel --------------------------
def _bimap_kernel(x_ref, wt_ref, w_ref, o_ref):
    """Batch-wide bilinear map  Y = Wt · blockdiag(X) · W  in one matmul pair.

    x_ref : (P_in, n_in, n_in)    input SPD blocks, P_in = B*c_in
    wt_ref: (K_out, K_in)         kron(I_B, W_packed)^T,  K_* = B*c_* * n_*
    w_ref : (K_in, K_out)         kron(I_B, W_packed)
    o_ref : (P_out, n_out, n_out) diagonal (b, c_out) blocks of Y
    """
    p_in, n_in, _ = x_ref.shape
    k_in = p_in * n_in
    p_out, n_out, _ = o_ref.shape

    def body(xbd_ref):
        # block-diagonal operand built in VMEM (no XLA mask-multiply, no HBM
        # round trip of a mostly-zeros tensor).
        xbd_ref[...] = jnp.zeros_like(xbd_ref)
        for q in range(p_in):                       # static unroll, P_in <= 8
            off = q * n_in
            xbd_ref[off:off + n_in, off:off + n_in] = x_ref[q]
        # two K-deep MXU matmuls cover every (batch, out-channel) product
        t = jnp.dot(wt_ref[...], xbd_ref[...], preferred_element_type=jnp.float32)
        y = jnp.dot(t, w_ref[...], preferred_element_type=jnp.float32)
        y = 0.5 * (y + y.T)                         # symmetrize once, then slice
        blocks = [y[q * n_out:(q + 1) * n_out, q * n_out:(q + 1) * n_out]
                  for q in range(p_out)]
        o_ref[...] = jnp.stack(blocks, axis=0).astype(o_ref.dtype)  # one store

    pl.run_scoped(body, pltpu.VMEM((k_in, k_in), jnp.float32))


def bimap_blockdiag(x_blocks, wt_bd, w_bd, p_out, n_out):
    """x_blocks: (P_in, n_in, n_in) -> (p_out, n_out, n_out)."""
    p_in, n_in, _ = x_blocks.shape
    k_in = p_in * n_in
    k_out = p_out * n_out
    flops = 2 * k_out * k_in * k_in + 2 * k_out * k_out * k_in
    nbytes = 4 * (x_blocks.size + wt_bd.size + w_bd.size + p_out * n_out * n_out)
    return pl.pallas_call(
        _bimap_kernel,
        out_shape=jax.ShapeDtypeStruct((p_out, n_out, n_out), jnp.float32),
        cost_estimate=pl.CostEstimate(flops=flops, transcendentals=0,
                                      bytes_accessed=nbytes),
    )(x_blocks, wt_bd, w_bd)


# ------------------ fused ReEig rebuild + decoder BiMap kernel ---------------
def _reeig_bimap_kernel(u_ref, s_ref, wt_ref, o_ref):
    """Fused  H_p = U_p max(S_p,eps) U_p^T  followed by  Y = Wt·blockdiag(H)·Wt^T.

    Computed as  m = Wt · blockdiag(U_p sqrt(max(S_p,eps))),  Y = m · m^T
    (exactly symmetric by construction — no separate symmetrization pass).

    u_ref : (P_in, n, n) eigenvectors,  s_ref: (P_in, n) eigenvalues
    wt_ref: (K_out, K_in) = kron(I_B, W_dec_packed)^T
    o_ref : (P_out, n_out, n_out)
    """
    p_in, n, _ = u_ref.shape
    k_in = p_in * n
    p_out, n_out, _ = o_ref.shape

    def body(abd_ref):
        g = jnp.sqrt(jnp.maximum(s_ref[...], EPS_REEIG))       # (P_in, n)
        abd_ref[...] = jnp.zeros_like(abd_ref)
        for q in range(p_in):                                   # static unroll
            off = q * n
            abd_ref[off:off + n, off:off + n] = u_ref[q] * g[q:q + 1, :]
        m = jnp.dot(wt_ref[...], abd_ref[...], preferred_element_type=jnp.float32)
        y = jnp.dot(m, m.T, preferred_element_type=jnp.float32)
        blocks = [y[q * n_out:(q + 1) * n_out, q * n_out:(q + 1) * n_out]
                  for q in range(p_out)]
        o_ref[...] = jnp.stack(blocks, axis=0).astype(o_ref.dtype)  # one store

    pl.run_scoped(body, pltpu.VMEM((k_in, k_in), jnp.float32))


def reeig_bimap(u, s, wt_bd, p_out, n_out):
    p_in, n, _ = u.shape
    k_in = p_in * n
    k_out = p_out * n_out
    flops = 2 * k_out * k_in * k_in + 2 * k_out * k_out * k_in
    nbytes = 4 * (u.size + s.size + wt_bd.size + p_out * n_out * n_out)
    return pl.pallas_call(
        _reeig_bimap_kernel,
        out_shape=jax.ShapeDtypeStruct((p_out, n_out, n_out), jnp.float32),
        cost_estimate=pl.CostEstimate(flops=flops, transcendentals=k_in,
                                      bytes_accessed=nbytes),
    )(u, s, wt_bd)


# ----------------------------- final ReEig kernel ----------------------------
def _reeig_kernel(u_ref, s_ref, o_ref):
    """R_p = U_p max(S_p, eps) U_p^T  via A_p A_p^T with A_p = U_p sqrt(f_p)."""
    p_n = u_ref.shape[0]
    g = jnp.sqrt(jnp.maximum(s_ref[...], EPS_REEIG))            # (P, n)
    blocks = []
    for q in range(p_n):                                        # static unroll
        a = u_ref[q] * g[q:q + 1, :]
        blocks.append(jnp.dot(a, a.T, preferred_element_type=jnp.float32))
    o_ref[...] = jnp.stack(blocks, axis=0).astype(o_ref.dtype)  # one store


def reeig(u, s):
    p, n, _ = u.shape
    flops = 2 * p * n * n * n
    nbytes = 4 * (2 * u.size + s.size)
    return pl.pallas_call(
        _reeig_kernel,
        out_shape=jax.ShapeDtypeStruct((p, n, n), jnp.float32),
        cost_estimate=pl.CostEstimate(flops=flops, transcendentals=p * n,
                                      bytes_accessed=nbytes),
    )(u, s)


# ------------------------------ parameters / model ---------------------------
def stiefel_init(key, c_out, c_in, n_in, n_out):
    """Deterministic semi-orthogonal BiMap weight (c_out, c_in, n_in, n_out)."""
    n = max(n_in, n_out)
    a = jax.random.normal(key, (c_out, c_in, n, n), dtype=jnp.float32)
    q, _ = jnp.linalg.qr(a)
    return jnp.asarray(q[..., :n_in, :n_out], dtype=jnp.float32)


def _pack_bimap_weight(w):
    """(c_out, c_in, n_in, n_out) -> (c_in*n_in, c_out*n_out),
       W_packed[ci*n_in + i, co*n_out + j] = w[co, ci, i, j]."""
    c_out, c_in, n_in, n_out = w.shape
    return jnp.transpose(w, (1, 2, 0, 3)).reshape(c_in * n_in, c_out * n_out)


class AutoencoderOneLayerSPDNetPallas:
    """encoder: BiMap(ho,hi,ni,no) -> ReEig -> LogEig
       decoder: ExpEig -> ReEig -> BiMap(hi,ho,no,ni) -> ReEig

       The LogEig->ExpEig->ReEig round trip is elided algebraically (exact up
       to eigh roundoff), so only 2 eigendecompositions remain per forward."""

    def __init__(self, ho, hi, ni, no, key):
        self.ho, self.hi, self.ni, self.no = ho, hi, ni, no
        k0, k1, k2 = jax.random.split(key, 3)
        # present in the torch module, unused by forward
        self.other_param = jax.random.normal(k0, (ho, hi, ni, no), dtype=jnp.float32)
        self.w_enc = stiefel_init(k1, ho, hi, ni, no)   # (ho, hi, ni, no)
        self.w_dec = stiefel_init(k2, hi, ho, no, ni)   # (hi, ho, no, ni)
        # channel-packed weights, computed eagerly once (no per-call XLA ops)
        self._wp_enc = _pack_bimap_weight(self.w_enc)   # (hi*ni, ho*no)
        self._wp_dec = _pack_bimap_weight(self.w_dec)   # (ho*no, hi*ni)
        self._batch_cache = {}

    def _batched_weights(self, B):
        # kron(I_B, W_packed): batch-block-diagonal weights so each BiMap is a
        # single batch-wide MXU matmul pair.  Built eagerly on concrete arrays
        # (runs once per batch size, embedded as constants in the jitted graph).
        if B not in self._batch_cache:
            eye = jnp.eye(B, dtype=jnp.float32)
            w1 = jnp.kron(eye, self._wp_enc)            # (B*hi*ni, B*ho*no)
            wt2 = jnp.kron(eye, self._wp_dec).T         # (B*hi*ni, B*ho*no)
            self._batch_cache[B] = (w1.T, w1, wt2)
        return self._batch_cache[B]

    def __call__(self, x):                              # x: (B, hi, ni, ni)
        B = x.shape[0]
        wt1, w1, wt2 = self._batched_weights(B)

        # encoder BiMap: one batch-wide matmul pair on a block-diagonal X
        x_blocks = x.reshape(B * self.hi, self.ni, self.ni)     # free reshape
        h1 = bimap_blockdiag(x_blocks, wt1, w1, B * self.ho, self.no)

        # single eigh; ReEig->LogEig->ExpEig->ReEig collapses to ReEig, so the
        # decoder BiMap reuses (S1, U1) directly (fused in one kernel below).
        # TODO(synk): the batched symmetric eigendecomposition stays in XLA; an
        # in-kernel fixed-sweep Jacobi (n<=16, P<=8) would fuse the whole
        # forward into a single pallas_call.
        s1, u1 = jnp.linalg.eigh(h1)

        # fused ReEig rebuild + decoder BiMap
        h2 = reeig_bimap(u1, s1, wt2, B * self.hi, self.ni)

        # final ReEig
        s2, u2 = jnp.linalg.eigh(h2)
        recon = reeig(u2, s2)

        # TODO(synk): the torch module casts to float64 (.double()); TPU JAX
        # keeps float32 (x64 disabled by default), so the cast is omitted.
        return recon.reshape(B, self.hi, self.ni, self.ni)


# ------------------------- pure-XLA reference (sanity) -----------------------
def _bimap_ref(x, w):
    # Y[b, co] = sum_ci W[co,ci]^T X[b,ci] W[co,ci]
    return jnp.einsum("cdij,bdik,cdkl->bcjl", w, x, w)


def _eig_ref(x, fn):
    s, u = jnp.linalg.eigh(x)
    return jnp.einsum("...ij,...j,...kj->...ik", u, fn(s), u)


def reference_forward(x, w_enc, w_dec):
    h = _bimap_ref(x, w_enc)
    code = _eig_ref(h, lambda s: jnp.log(jnp.maximum(s, EPS_REEIG)))   # ReEig->LogEig
    h = _eig_ref(code, lambda s: jnp.maximum(jnp.exp(s), EPS_REEIG))   # ExpEig->ReEig
    h = _bimap_ref(h, w_dec)
    return _eig_ref(h, lambda s: jnp.maximum(s, EPS_REEIG))            # final ReEig


# ----------------------------------- main ------------------------------------
if __name__ == "__main__":
    ho, hi, ni, no = 4, 2, 16, 8
    B = 2

    key = jax.random.PRNGKey(0)
    k_w, k_x = jax.random.split(key)

    model = AutoencoderOneLayerSPDNetPallas(ho, hi, ni, no, k_w)

    # deterministic SPD inputs: A A^T / ni + 0.01 I
    a = jax.random.normal(k_x, (B, hi, ni, ni), dtype=jnp.float32)
    x = jnp.einsum("bcij,bckj->bcik", a, a) / ni + 1e-2 * jnp.eye(ni, dtype=jnp.float32)

    fwd = jax.jit(lambda inp: model(inp))   # 3 pallas_calls + 2 eigh, one dispatch
    out = jax.block_until_ready(fwd(x))

    assert out.shape == (B, hi, ni, ni), out.shape
    assert bool(jnp.all(jnp.isfinite(out)))

    # sanity check against a pure-XLA implementation of the torch forward
    ref = jax.block_until_ready(reference_forward(x, model.w_enc, model.w_dec))
    max_err = float(jnp.max(jnp.abs(out - ref)))
    assert max_err < 5e-2, max_err

    print("KERNEL_OK")
</pallas_src>

<mosaic_0001>
module attributes {stable_mosaic.version = 11 : i64} {
  func.func @_bimap_kernel(%arg0: memref<4x16x16xf32, #tpu.memory_space<vmem>>, %arg1: memref<64x64xf32, #tpu.memory_space<vmem>>, %arg2: memref<64x64xf32, #tpu.memory_space<vmem>>, %arg3: memref<8x8x8xf32, #tpu.memory_space<vmem>>) attributes {dimension_semantics = [], scalar_prefetch = 0 : i64, scratch_operands = 0 : i64, tpu.core_type = #tpu.core_type<tc>} {
    "tpu.region"() ({
      %alloca = memref.alloca() : memref<64x64xf32, #tpu.memory_space<vmem>>
      %cst = arith.constant 0.000000e+00 : f32
      %0 = vector.broadcast %cst : f32 to vector<64x64xf32>
      %c0 = arith.constant 0 : index
      %c0_0 = arith.constant 0 : index
      %1 = vector.load %alloca[%c0, %c0_0] : memref<64x64xf32, #tpu.memory_space<vmem>>, vector<64x64xf32>
      tpu.vector_store %alloca[%c0, %c0_0], %0 {strides = array<i32>} : memref<64x64xf32, #tpu.memory_space<vmem>>, vector<64x64xf32>,
      %c0_1 = arith.constant 0 : index
      %c0_2 = arith.constant 0 : index
      %c0_3 = arith.constant 0 : index
      %2 = vector.load %arg0[%c0_1, %c0_2, %c0_3] : memref<4x16x16xf32, #tpu.memory_space<vmem>>, vector<1x16x16xf32>
      %3 = vector.shape_cast %2 : vector<1x16x16xf32> to vector<16x16xf32>
      %c0_4 = arith.constant 0 : index
      %c0_5 = arith.constant 0 : index
      %4 = vector.load %alloca[%c0_4, %c0_5] : memref<64x64xf32, #tpu.memory_space<vmem>>, vector<16x16xf32>
      tpu.vector_store %alloca[%c0_4, %c0_5], %3 {strides = array<i32>} : memref<64x64xf32, #tpu.memory_space<vmem>>, vector<16x16xf32>,
      %c1 = arith.constant 1 : index
      %c0_6 = arith.constant 0 : index
      %c0_7 = arith.constant 0 : index
      %5 = vector.load %arg0[%c1, %c0_6, %c0_7] : memref<4x16x16xf32, #tpu.memory_space<vmem>>, vector<1x16x16xf32>
      %6 = vector.shape_cast %5 : vector<1x16x16xf32> to vector<16x16xf32>
      %c16 = arith.constant 16 : index
      %c16_8 = arith.constant 16 : index
      %7 = vector.load %alloca[%c16, %c16_8] : memref<64x64xf32, #tpu.memory_space<vmem>>, vector<16x16xf32>
      tpu.vector_store %alloca[%c16, %c16_8], %6 {strides = array<i32>} : memref<64x64xf32, #tpu.memory_space<vmem>>, vector<16x16xf32>,
      %c2 = arith.constant 2 : index
      %c0_9 = arith.constant 0 : index
      %c0_10 = arith.constant 0 : index
      %8 = vector.load %arg0[%c2, %c0_9, %c0_10] : memref<4x16x16xf32, #tpu.memory_space<vmem>>, vector<1x16x16xf32>
      %9 = vector.shape_cast %8 : vector<1x16x16xf32> to vector<16x16xf32>
      %c32 = arith.constant 32 : index
      %c32_11 = arith.constant 32 : index
      %10 = vector.load %alloca[%c32, %c32_11] : memref<64x64xf32, #tpu.memory_space<vmem>>, vector<16x16xf32>
      tpu.vector_store %alloca[%c32, %c32_11], %9 {strides = array<i32>} : memref<64x64xf32, #tpu.memory_space<vmem>>, vector<16x16xf32>,
      %c3 = arith.constant 3 : index
      %c0_12 = arith.constant 0 : index
      %c0_13 = arith.constant 0 : index
      %11 = vector.load %arg0[%c3, %c0_12, %c0_13] : memref<4x16x16xf32, #tpu.memory_space<vmem>>, vector<1x16x16xf32>
      %12 = vector.shape_cast %11 : vector<1x16x16xf32> to vector<16x16xf32>
      %c48 = arith.constant 48 : index
      %c48_14 = arith.constant 48 : index
      %13 = vector.load %alloca[%c48, %c48_14] : memref<64x64xf32, #tpu.memory_space<vmem>>, vector<16x16xf32>
      tpu.vector_store %alloca[%c48, %c48_14], %12 {strides = array<i32>} : memref<64x64xf32, #tpu.memory_space<vmem>>, vector<16x16xf32>,
      %c0_15 = arith.constant 0 : index
      %c0_16 = arith.constant 0 : index
      %14 = vector.load %arg1[%c0_15, %c0_16] : memref<64x64xf32, #tpu.memory_space<vmem>>, vector<64x64xf32>
      %c0_17 = arith.constant 0 : index
      %c0_18 = arith.constant 0 : index
      %15 = vector.load %alloca[%c0_17, %c0_18] : memref<64x64xf32, #tpu.memory_space<vmem>>, vector<64x64xf32>
      %cst_19 = arith.constant dense<0.000000e+00> : vector<64x64xf32>
      %16 = tpu.matmul %14, %15, %cst_19 {dimension_numbers = #tpu.dot_dimension_numbers<[1], [0], [0], [1], [0, 0, 1, 1], [], []>} : vector<64x64xf32>, vector<64x64xf32>, vector<64x64xf32> -> vector<64x64xf32>
      %c0_20 = arith.constant 0 : index
      %c0_21 = arith.constant 0 : index
      %17 = vector.load %arg2[%c0_20, %c0_21] : memref<64x64xf32, #tpu.memory_space<vmem>>, vector<64x64xf32>
      %cst_22 = arith.constant dense<0.000000e+00> : vector<64x64xf32>
      %18 = tpu.matmul %16, %17, %cst_22 {dimension_numbers = #tpu.dot_dimension_numbers<[1], [0], [0], [1], [0, 0, 1, 1], [], []>} : vector<64x64xf32>, vector<64x64xf32>, vector<64x64xf32> -> vector<64x64xf32>
      %19 = tpu.transpose %18, [1, 0] : vector<64x64xf32> -> vector<64x64xf32>
      %20 = arith.addf %18, %19 : vector<64x64xf32>
      %cst_23 = arith.constant 5.000000e-01 : f32
      %21 = vector.broadcast %cst_23 : f32 to vector<64x64xf32>
      %22 = arith.mulf %21, %20 : vector<64x64xf32>
      %23 = vector.extract_strided_slice %22 {offsets = [0, 0], sizes = [8, 8], strides = [1, 1]} : vector<64x64xf32> to vector<8x8xf32>
      %24 = vector.extract_strided_slice %22 {offsets = [8, 8], sizes = [8, 8], strides = [1, 1]} : vector<64x64xf32> to vector<8x8xf32>
      %25 = vector.extract_strided_slice %22 {offsets = [16, 16], sizes = [8, 8], strides = [1, 1]} : vector<64x64xf32> to vector<8x8xf32>
      %26 = vector.extract_strided_slice %22 {offsets = [24, 24], sizes = [8, 8], strides = [1, 1]} : vector<64x64xf32> to vector<8x8xf32>
      %27 = vector.extract_strided_slice %22 {offsets = [32, 32], sizes = [8, 8], strides = [1, 1]} : vector<64x64xf32> to vector<8x8xf32>
      %28 = vector.extract_strided_slice %22 {offsets = [40, 40], sizes = [8, 8], strides = [1, 1]} : vector<64x64xf32> to vector<8x8xf32>
      %29 = vector.extract_strided_slice %22 {offsets = [48, 48], sizes = [8, 8], strides = [1, 1]} : vector<64x64xf32> to vector<8x8xf32>
      %30 = vector.extract_strided_slice %22 {offsets = [56, 56], sizes = [8, 8], strides = [1, 1]} : vector<64x64xf32> to vector<8x8xf32>
      %31 = vector.shape_cast %23 : vector<8x8xf32> to vector<1x8x8xf32>
      %32 = vector.shape_cast %24 : vector<8x8xf32> to vector<1x8x8xf32>
      %33 = vector.shape_cast %25 : vector<8x8xf32> to vector<1x8x8xf32>
      %34 = vector.shape_cast %26 : vector<8x8xf32> to vector<1x8x8xf32>
      %35 = vector.shape_cast %27 : vector<8x8xf32> to vector<1x8x8xf32>
      %36 = vector.shape_cast %28 : vector<8x8xf32> to vector<1x8x8xf32>
      %37 = vector.shape_cast %29 : vector<8x8xf32> to vector<1x8x8xf32>
      %38 = vector.shape_cast %30 : vector<8x8xf32> to vector<1x8x8xf32>
      %39 = tpu.concatenate %31, %32, %33, %34, %35, %36, %37, %38 in 0 : vector<1x8x8xf32>, vector<1x8x8xf32>, vector<1x8x8xf32>, vector<1x8x8xf32>, vector<1x8x8xf32>, vector<1x8x8xf32>, vector<1x8x8xf32>, vector<1x8x8xf32> -> vector<8x8x8xf32>
      %c0_24 = arith.constant 0 : index
      %c0_25 = arith.constant 0 : index
      %c0_26 = arith.constant 0 : index
      %40 = vector.load %arg3[%c0_24, %c0_25, %c0_26] : memref<8x8x8xf32, #tpu.memory_space<vmem>>, vector<8x8x8xf32>
      tpu.vector_store %arg3[%c0_24, %c0_25, %c0_26], %39 {strides = array<i32>} : memref<8x8x8xf32, #tpu.memory_space<vmem>>, vector<8x8x8xf32>,
      tpu.yield
    }) : () -> ()
    return
  }
}

module attributes {stable_mosaic.version = 11 : i64} {
  func.func @_reeig_bimap_kernel(%arg0: memref<8x8x8xf32, #tpu.memory_space<vmem>>, %arg1: memref<8x8xf32, #tpu.memory_space<vmem>>, %arg2: memref<64x64xf32, #tpu.memory_space<vmem>>, %arg3: memref<4x16x16xf32, #tpu.memory_space<vmem>>) attributes {dimension_semantics = [], scalar_prefetch = 0 : i64, scratch_operands = 0 : i64, tpu.core_type = #tpu.core_type<tc>} {
    "tpu.region"() ({
      %alloca = memref.alloca() : memref<64x64xf32, #tpu.memory_space<vmem>>
      %c0 = arith.constant 0 : index
      %c0_0 = arith.constant 0 : index
      %0 = vector.load %arg1[%c0, %c0_0] : memref<8x8xf32, #tpu.memory_space<vmem>>, vector<8x8xf32>
      %cst = arith.constant 9.99999974E-5 : f32
      %1 = vector.broadcast %cst : f32 to vector<8x8xf32>
      %2 = arith.maximumf %0, %1 : vector<8x8xf32>
      %3 = math.sqrt %2 : vector<8x8xf32>
      %cst_1 = arith.constant 0.000000e+00 : f32
      %4 = vector.broadcast %cst_1 : f32 to vector<64x64xf32>
      %c0_2 = arith.constant 0 : index
      %c0_3 = arith.constant 0 : index
      %5 = vector.load %alloca[%c0_2, %c0_3] : memref<64x64xf32, #tpu.memory_space<vmem>>, vector<64x64xf32>
      tpu.vector_store %alloca[%c0_2, %c0_3], %4 {strides = array<i32>} : memref<64x64xf32, #tpu.memory_space<vmem>>, vector<64x64xf32>,
      %c0_4 = arith.constant 0 : index
      %c0_5 = arith.constant 0 : index
      %c0_6 = arith.constant 0 : index
      %6 = vector.load %arg0[%c0_4, %c0_5, %c0_6] : memref<8x8x8xf32, #tpu.memory_space<vmem>>, vector<1x8x8xf32>
      %7 = vector.shape_cast %6 : vector<1x8x8xf32> to vector<8x8xf32>
      %8 = vector.extract_strided_slice %3 {offsets = [0, 0], sizes = [1, 8], strides = [1, 1]} : vector<8x8xf32> to vector<1x8xf32>
      %9 = vector.broadcast %8 : vector<1x8xf32> to vector<8x8xf32>
      %10 = arith.mulf %7, %9 : vector<8x8xf32>
      %c0_7 = arith.constant 0 : index
      %c0_8 = arith.constant 0 : index
      %11 = vector.load %alloca[%c0_7, %c0_8] : memref<64x64xf32, #tpu.memory_space<vmem>>, vector<8x8xf32>
      tpu.vector_store %alloca[%c0_7, %c0_8], %10 {strides = array<i32>} : memref<64x64xf32, #tpu.memory_space<vmem>>, vector<8x8xf32>,
      %c1 = arith.constant 1 : index
      %c0_9 = arith.constant 0 : index
      %c0_10 = arith.constant 0 : index
      %12 = vector.load %arg0[%c1, %c0_9, %c0_10] : memref<8x8x8xf32, #tpu.memory_space<vmem>>, vector<1x8x8xf32>
      %13 = vector.shape_cast %12 : vector<1x8x8xf32> to vector<8x8xf32>
      %14 = vector.extract_strided_slice %3 {offsets = [1, 0], sizes = [1, 8], strides = [1, 1]} : vector<8x8xf32> to vector<1x8xf32>
      %15 = vector.broadcast %14 : vector<1x8xf32> to vector<8x8xf32>
      %16 = arith.mulf %13, %15 : vector<8x8xf32>
      %c8 = arith.constant 8 : index
      %c8_11 = arith.constant 8 : index
      %17 = vector.load %alloca[%c8, %c8_11] : memref<64x64xf32, #tpu.memory_space<vmem>>, vector<8x8xf32>
      tpu.vector_store %alloca[%c8, %c8_11], %16 {strides = array<i32>} : memref<64x64xf32, #tpu.memory_space<vmem>>, vector<8x8xf32>,
      %c2 = arith.constant 2 : index
      %c0_12 = arith.constant 0 : index
      %c0_13 = arith.constant 0 : index
      %18 = vector.load %arg0[%c2, %c0_12, %c0_13] : memref<8x8x8xf32, #tpu.memory_space<vmem>>, vector<1x8x8xf32>
      %19 = vector.shape_cast %18 : vector<1x8x8xf32> to vector<8x8xf32>
      %20 = vector.extract_strided_slice %3 {offsets = [2, 0], sizes = [1, 8], strides = [1, 1]} : vector<8x8xf32> to vector<1x8xf32>
      %21 = vector.broadcast %20 : vector<1x8xf32> to vector<8x8xf32>
      %22 = arith.mulf %19, %21 : vector<8x8xf32>
      %c16 = arith.constant 16 : index
      %c16_14 = arith.constant 16 : index
      %23 = vector.load %alloca[%c16, %c16_14] : memref<64x64xf32, #tpu.memory_space<vmem>>, vector<8x8xf32>
      tpu.vector_store %alloca[%c16, %c16_14], %22 {strides = array<i32>} : memref<64x64xf32, #tpu.memory_space<vmem>>, vector<8x8xf32>,
      %c3 = arith.constant 3 : index
      %c0_15 = arith.constant 0 : index
      %c0_16 = arith.constant 0 : index
      %24 = vector.load %arg0[%c3, %c0_15, %c0_16] : memref<8x8x8xf32, #tpu.memory_space<vmem>>, vector<1x8x8xf32>
      %25 = vector.shape_cast %24 : vector<1x8x8xf32> to vector<8x8xf32>
      %26 = vector.extract_strided_slice %3 {offsets = [3, 0], sizes = [1, 8], strides = [1, 1]} : vector<8x8xf32> to vector<1x8xf32>
      %27 = vector.broadcast %26 : vector<1x8xf32> to vector<8x8xf32>
      %28 = arith.mulf %25, %27 : vector<8x8xf32>
      %c24 = arith.constant 24 : index
      %c24_17 = arith.constant 24 : index
      %29 = vector.load %alloca[%c24, %c24_17] : memref<64x64xf32, #tpu.memory_space<vmem>>, vector<8x8xf32>
      tpu.vector_store %alloca[%c24, %c24_17], %28 {strides = array<i32>} : memref<64x64xf32, #tpu.memory_space<vmem>>, vector<8x8xf32>,
      %c4 = arith.constant 4 : index
      %c0_18 = arith.constant 0 : index
      %c0_19 = arith.constant 0 : index
      %30 = vector.load %arg0[%c4, %c0_18, %c0_19] : memref<8x8x8xf32, #tpu.memory_space<vmem>>, vector<1x8x8xf32>
      %31 = vector.shape_cast %30 : vector<1x8x8xf32> to vector<8x8xf32>
      %32 = vector.extract_strided_slice %3 {offsets = [4, 0], sizes = [1, 8], strides = [1, 1]} : vector<8x8xf32> to vector<1x8xf32>
      %33 = vector.broadcast %32 : vector<1x8xf32> to vector<8x8xf32>
      %34 = arith.mulf %31, %33 : vector<8x8xf32>
      %c32 = arith.constant 32 : index
      %c32_20 = arith.constant 32 : index
      %35 = vector.load %alloca[%c32, %c32_20] : memref<64x64xf32, #tpu.memory_space<vmem>>, vector<8x8xf32>
      tpu.vector_store %alloca[%c32, %c32_20], %34 {strides = array<i32>} : memref<64x64xf32, #tpu.memory_space<vmem>>, vector<8x8xf32>,
      %c5 = arith.constant 5 : index
      %c0_21 = arith.constant 0 : index
      %c0_22 = arith.constant 0 : index
      %36 = vector.load %arg0[%c5, %c0_21, %c0_22] : memref<8x8x8xf32, #tpu.memory_space<vmem>>, vector<1x8x8xf32>
      %37 = vector.shape_cast %36 : vector<1x8x8xf32> to vector<8x8xf32>
      %38 = vector.extract_strided_slice %3 {offsets = [5, 0], sizes = [1, 8], strides = [1, 1]} : vector<8x8xf32> to vector<1x8xf32>
      %39 = vector.broadcast %38 : vector<1x8xf32> to vector<8x8xf32>
      %40 = arith.mulf %37, %39 : vector<8x8xf32>
      %c40 = arith.constant 40 : index
      %c40_23 = arith.constant 40 : index
      %41 = vector.load %alloca[%c40, %c40_23] : memref<64x64xf32, #tpu.memory_space<vmem>>, vector<8x8xf32>
      tpu.vector_store %alloca[%c40, %c40_23], %40 {strides = array<i32>} : memref<64x64xf32, #tpu.memory_space<vmem>>, vector<8x8xf32>,
      %c6 = arith.constant 6 : index
      %c0_24 = arith.constant 0 : index
      %c0_25 = arith.constant 0 : index
      %42 = vector.load %arg0[%c6, %c0_24, %c0_25] : memref<8x8x8xf32, #tpu.memory_space<vmem>>, vector<1x8x8xf32>
      %43 = vector.shape_cast %42 : vector<1x8x8xf32> to vector<8x8xf32>
      %44 = vector.extract_strided_slice %3 {offsets = [6, 0], sizes = [1, 8], strides = [1, 1]} : vector<8x8xf32> to vector<1x8xf32>
      %45 = vector.broadcast %44 : vector<1x8xf32> to vector<8x8xf32>
      %46 = arith.mulf %43, %45 : vector<8x8xf32>
      %c48 = arith.constant 48 : index
      %c48_26 = arith.constant 48 : index
      %47 = vector.load %alloca[%c48, %c48_26] : memref<64x64xf32, #tpu.memory_space<vmem>>, vector<8x8xf32>
      tpu.vector_store %alloca[%c48, %c48_26], %46 {strides = array<i32>} : memref<64x64xf32, #tpu.memory_space<vmem>>, vector<8x8xf32>,
      %c7 = arith.constant 7 : index
      %c0_27 = arith.constant 0 : index
      %c0_28 = arith.constant 0 : index
      %48 = vector.load %arg0[%c7, %c0_27, %c0_28] : memref<8x8x8xf32, #tpu.memory_space<vmem>>, vector<1x8x8xf32>
      %49 = vector.shape_cast %48 : vector<1x8x8xf32> to vector<8x8xf32>
      %50 = vector.extract_strided_slice %3 {offsets = [7, 0], sizes = [1, 8], strides = [1, 1]} : vector<8x8xf32> to vector<1x8xf32>
      %51 = vector.broadcast %50 : vector<1x8xf32> to vector<8x8xf32>
      %52 = arith.mulf %49, %51 : vector<8x8xf32>
      %c56 = arith.constant 56 : index
      %c56_29 = arith.constant 56 : index
      %53 = vector.load %alloca[%c56, %c56_29] : memref<64x64xf32, #tpu.memory_space<vmem>>, vector<8x8xf32>
      tpu.vector_store %alloca[%c56, %c56_29], %52 {strides = array<i32>} : memref<64x64xf32, #tpu.memory_space<vmem>>, vector<8x8xf32>,
      %c0_30 = arith.constant 0 : index
      %c0_31 = arith.constant 0 : index
      %54 = vector.load %arg2[%c0_30, %c0_31] : memref<64x64xf32, #tpu.memory_space<vmem>>, vector<64x64xf32>
      %c0_32 = arith.constant 0 : index
      %c0_33 = arith.constant 0 : index
      %55 = vector.load %alloca[%c0_32, %c0_33] : memref<64x64xf32, #tpu.memory_space<vmem>>, vector<64x64xf32>
      %cst_34 = arith.constant dense<0.000000e+00> : vector<64x64xf32>
      %56 = tpu.matmul %54, %55, %cst_34 {dimension_numbers = #tpu.dot_dimension_numbers<[1], [0], [0], [1], [0, 0, 1, 1], [], []>} : vector<64x64xf32>, vector<64x64xf32>, vector<64x64xf32> -> vector<64x64xf32>
      %57 = tpu.transpose %56, [1, 0] : vector<64x64xf32> -> vector<64x64xf32>
      %cst_35 = arith.constant dense<0.000000e+00> : vector<64x64xf32>
      %58 = tpu.matmul %56, %57, %cst_35 {dimension_numbers = #tpu.dot_dimension_numbers<[1], [0], [0], [1], [0, 0, 1, 1], [], []>} : vector<64x64xf32>, vector<64x64xf32>, vector<64x64xf32> -> vector<64x64xf32>
      %59 = vector.extract_strided_slice %58 {offsets = [0, 0], sizes = [16, 16], strides = [1, 1]} : vector<64x64xf32> to vector<16x16xf32>
      %60 = vector.extract_strided_slice %58 {offsets = [16, 16], sizes = [16, 16], strides = [1, 1]} : vector<64x64xf32> to vector<16x16xf32>
      %61 = vector.extract_strided_slice %58 {offsets = [32, 32], sizes = [16, 16], strides = [1, 1]} : vector<64x64xf32> to vector<16x16xf32>
      %62 = vector.extract_strided_slice %58 {offsets = [48, 48], sizes = [16, 16], strides = [1, 1]} : vector<64x64xf32> to vector<16x16xf32>
      %63 = vector.shape_cast %59 : vector<16x16xf32> to vector<1x16x16xf32>
      %64 = vector.shape_cast %60 : vector<16x16xf32> to vector<1x16x16xf32>
      %65 = vector.shape_cast %61 : vector<16x16xf32> to vector<1x16x16xf32>
      %66 = vector.shape_cast %62 : vector<16x16xf32> to vector<1x16x16xf32>
      %67 = tpu.concatenate %63, %64, %65, %66 in 0 : vector<1x16x16xf32>, vector<1x16x16xf32>, vector<1x16x16xf32>, vector<1x16x16xf32> -> vector<4x16x16xf32>
      %c0_36 = arith.constant 0 : index
      %c0_37 = arith.constant 0 : index
      %c0_38 = arith.constant 0 : index
      %68 = vector.load %arg3[%c0_36, %c0_37, %c0_38] : memref<4x16x16xf32, #tpu.memory_space<vmem>>, vector<4x16x16xf32>
      tpu.vector_store %arg3[%c0_36, %c0_37, %c0_38], %67 {strides = array<i32>} : memref<4x16x16xf32, #tpu.memory_space<vmem>>, vector<4x16x16xf32>,
      tpu.yield
    }) : () -> ()
    return
  }
}

module attributes {stable_mosaic.version = 11 : i64} {
  func.func @_reeig_kernel(%arg0: memref<4x16x16xf32, #tpu.memory_space<vmem>>, %arg1: memref<4x16xf32, #tpu.memory_space<vmem>>, %arg2: memref<4x16x16xf32, #tpu.memory_space<vmem>>) attributes {dimension_semantics = [], scalar_prefetch = 0 : i64, scratch_operands = 0 : i64, tpu.core_type = #tpu.core_type<tc>} {
    %c0 = arith.constant 0 : index
    %c0_0 = arith.constant 0 : index
    %0 = vector.load %arg1[%c0, %c0_0] : memref<4x16xf32, #tpu.memory_space<vmem>>, vector<4x16xf32>
    %cst = arith.constant 9.99999974E-5 : f32
    %1 = vector.broadcast %cst : f32 to vector<4x16xf32>
    %2 = arith.maximumf %0, %1 : vector<4x16xf32>
    %3 = math.sqrt %2 : vector<4x16xf32>
    %c0_1 = arith.constant 0 : index
    %c0_2 = arith.constant 0 : index
    %c0_3 = arith.constant 0 : index
    %4 = vector.load %arg0[%c0_1, %c0_2, %c0_3] : memref<4x16x16xf32, #tpu.memory_space<vmem>>, vector<1x16x16xf32>
    %5 = vector.shape_cast %4 : vector<1x16x16xf32> to vector<16x16xf32>
    %6 = vector.extract_strided_slice %3 {offsets = [0, 0], sizes = [1, 16], strides = [1, 1]} : vector<4x16xf32> to vector<1x16xf32>
    %7 = vector.broadcast %6 : vector<1x16xf32> to vector<16x16xf32>
    %8 = arith.mulf %5, %7 : vector<16x16xf32>
    %9 = tpu.transpose %8, [1, 0] : vector<16x16xf32> -> vector<16x16xf32>
    %cst_4 = arith.constant dense<0.000000e+00> : vector<16x16xf32>
    %10 = tpu.matmul %8, %9, %cst_4 {dimension_numbers = #tpu.dot_dimension_numbers<[1], [0], [0], [1], [0, 0, 1, 1], [], []>} : vector<16x16xf32>, vector<16x16xf32>, vector<16x16xf32> -> vector<16x16xf32>
    %c1 = arith.constant 1 : index
    %c0_5 = arith.constant 0 : index
    %c0_6 = arith.constant 0 : index
    %11 = vector.load %arg0[%c1, %c0_5, %c0_6] : memref<4x16x16xf32, #tpu.memory_space<vmem>>, vector<1x16x16xf32>
    %12 = vector.shape_cast %11 : vector<1x16x16xf32> to vector<16x16xf32>
    %13 = vector.extract_strided_slice %3 {offsets = [1, 0], sizes = [1, 16], strides = [1, 1]} : vector<4x16xf32> to vector<1x16xf32>
    %14 = vector.broadcast %13 : vector<1x16xf32> to vector<16x16xf32>
    %15 = arith.mulf %12, %14 : vector<16x16xf32>
    %16 = tpu.transpose %15, [1, 0] : vector<16x16xf32> -> vector<16x16xf32>
    %cst_7 = arith.constant dense<0.000000e+00> : vector<16x16xf32>
    %17 = tpu.matmul %15, %16, %cst_7 {dimension_numbers = #tpu.dot_dimension_numbers<[1], [0], [0], [1], [0, 0, 1, 1], [], []>} : vector<16x16xf32>, vector<16x16xf32>, vector<16x16xf32> -> vector<16x16xf32>
    %c2 = arith.constant 2 : index
    %c0_8 = arith.constant 0 : index
    %c0_9 = arith.constant 0 : index
    %18 = vector.load %arg0[%c2, %c0_8, %c0_9] : memref<4x16x16xf32, #tpu.memory_space<vmem>>, vector<1x16x16xf32>
    %19 = vector.shape_cast %18 : vector<1x16x16xf32> to vector<16x16xf32>
    %20 = vector.extract_strided_slice %3 {offsets = [2, 0], sizes = [1, 16], strides = [1, 1]} : vector<4x16xf32> to vector<1x16xf32>
    %21 = vector.broadcast %20 : vector<1x16xf32> to vector<16x16xf32>
    %22 = arith.mulf %19, %21 : vector<16x16xf32>
    %23 = tpu.transpose %22, [1, 0] : vector<16x16xf32> -> vector<16x16xf32>
    %cst_10 = arith.constant dense<0.000000e+00> : vector<16x16xf32>
    %24 = tpu.matmul %22, %23, %cst_10 {dimension_numbers = #tpu.dot_dimension_numbers<[1], [0], [0], [1], [0, 0, 1, 1], [], []>} : vector<16x16xf32>, vector<16x16xf32>, vector<16x16xf32> -> vector<16x16xf32>
    %c3 = arith.constant 3 : index
    %c0_11 = arith.constant 0 : index
    %c0_12 = arith.constant 0 : index
    %25 = vector.load %arg0[%c3, %c0_11, %c0_12] : memref<4x16x16xf32, #tpu.memory_space<vmem>>, vector<1x16x16xf32>
    %26 = vector.shape_cast %25 : vector<1x16x16xf32> to vector<16x16xf32>
    %27 = vector.extract_strided_slice %3 {offsets = [3, 0], sizes = [1, 16], strides = [1, 1]} : vector<4x16xf32> to vector<1x16xf32>
    %28 = vector.broadcast %27 : vector<1x16xf32> to vector<16x16xf32>
    %29 = arith.mulf %26, %28 : vector<16x16xf32>
    %30 = tpu.transpose %29, [1, 0] : vector<16x16xf32> -> vector<16x16xf32>
    %cst_13 = arith.constant dense<0.000000e+00> : vector<16x16xf32>
    %31 = tpu.matmul %29, %30, %cst_13 {dimension_numbers = #tpu.dot_dimension_numbers<[1], [0], [0], [1], [0, 0, 1, 1], [], []>} : vector<16x16xf32>, vector<16x16xf32>, vector<16x16xf32> -> vector<16x16xf32>
    %32 = vector.shape_cast %10 : vector<16x16xf32> to vector<1x16x16xf32>
    %33 = vector.shape_cast %17 : vector<16x16xf32> to vector<1x16x16xf32>
    %34 = vector.shape_cast %24 : vector<16x16xf32> to vector<1x16x16xf32>
    %35 = vector.shape_cast %31 : vector<16x16xf32> to vector<1x16x16xf32>
    %36 = tpu.concatenate %32, %33, %34, %35 in 0 : vector<1x16x16xf32>, vector<1x16x16xf32>, vector<1x16x16xf32>, vector<1x16x16xf32> -> vector<4x16x16xf32>
    %c0_14 = arith.constant 0 : index
    %c0_15 = arith.constant 0 : index
    %c0_16 = arith.constant 0 : index
    %37 = vector.load %arg2[%c0_14, %c0_15, %c0_16] : memref<4x16x16xf32, #tpu.memory_space<vmem>>, vector<4x16x16xf32>
    tpu.vector_store %arg2[%c0_14, %c0_15, %c0_16], %36 {strides = array<i32>} : memref<4x16x16xf32, #tpu.memory_space<vmem>>, vector<4x16x16xf32>,
    return
  }
}

</mosaic_0001>

<bundles_post_ra>
// kernel: custom-call.4
= control target key start
LH: loop header
LB: loop body
LE: loop exit
PB: predicated region body
PF: predicated region fallthrough
CT: control target
= control target key end

     0   :  { %s1724_s30 = smov 0   ;;  %s1726_s10 = smov 0   ;;  %s2051_s0 = inlined_call_operand.vmem [shape: f32[8,4,4], index: 0, kind: input, shape index: {}]   ;;  %s2052_s1 = inlined_call_operand.vmem [shape: f32[8,4,4], index: 1, kind: input, shape index: {}]   ;;  %s2053_s2 = inlined_call_operand.vmem [shape: f32[8,4,4], index: 2, kind: input, shape index: {}]   ;;  %s2054_s3 = inlined_call_operand.vmem [shape: f32[8,4,4], index: 3, kind: input, shape index: {}]   ;;  %s2055_s4 = inlined_call_operand.vmem [shape: f32[8,4], index: 4, kind: output, shape index: {0}]   ;;  %s2056_s5 = inlined_call_operand.vmem [shape: f32[8,4], index: 5, kind: output, shape index: {1}]   ;;  %s2057_s6 = inlined_call_operand.vmem [shape: f32[8,4,4], index: 6, kind: output, shape index: {2}]   ;;  %s2058_s7 = inlined_call_operand.vmem [shape: f32[8,4,4], index: 7, kind: output, shape index: {3}]   ;;  %s2059_s8 = inlined_call_operand.vmem [shape: f32[8,4,4], index: 8, kind: output, shape index: {4}]   ;;  %s2060_s9 = inlined_call_operand.vmem [shape: f32[8,4,4], index: 9, kind: output, shape index: {5}]  }
   0x1   :  { %s1728_s11 = smov 0  }
   0x2 LB: > { %s1740_s12 = sadd.s32 4294967295, %s1661_s11   ;;  %s1743_s13 = sadd.s32 1, %s1661_s11   ;;  %s1661_s11 = sphi %s1728_s11, %s2079_s11   ;;  %s1657_s10 = sphi %s1726_s10, %s2078_s10   ;;  %s1653_s30 = sphi %s1724_s30, %s2077_s30  }
   0x3   : > { %s20_s14 = sshrl.u32 %s1661_s11, 3  ;;  %s21_s15 = sshrl.u32 %s1743_s13, 3 }
   0x4   : > { %s22_s16 = ssub.s32 %s20_s14, %s21_s15  ;;  %s25_s17 = sadd.s32 1, %s1657_s10 }
   0x5   : > { %p23_p0 = scmp.eq.s32.totalorder %s22_s16, 0  ;;  %p35_p1 = scmp.ne.s32.totalorder %s1657_s10, %s1653_s30 }
   0x6   : > { %p36_p2 = scmp.eq.s32.totalorder %s1740_s12, 7  ;;  %p1522_p4 = scmp.ge.s32.totalorder %s1661_s11, 8 }
   0x7   : > { %s1752_s18 = scalar_select %p23_p0, %s1657_s10, %s25_s17  }
   0x8   : > { %p1754_p3 = por %p36_p2, %p35_p1  ;;  %86 = sbr.rel (%p1522_p4) target bundleno = 18 (0x12), region = 16 }
   0x9   : > { %2061 = sst [smem:[#allocation31_spill]] %s1752_s18  ;;  %s88_s20 = sand.u32 (!%p1522_p4), 1, %s1661_s11  }
   0xa   : > { %s1524_s21 = sshll.u32 (!%p1522_p4), %s1661_s11, 2  ;;  %s1523_s22 = sshll.u32 (!%p1522_p4), %s88_s20, 2 }
   0xb   : > { %s92_s25 = scalar_lea.vmem (!%p1522_p4), %s2051_s0, %s1524_s21  ;;  %s90_s26 = scalar_lea.vmem (!%p1522_p4), [#allocation1], %s1523_s22 }
   0xc   : > { %s131_s29 = scalar_lea.vmem (!%p1522_p4), %s2052_s1, %s1524_s21  ;;  %s170_s16 = scalar_lea.vmem (!%p1522_p4), %s2053_s2, %s1524_s21 }
   0xd   : > { %v109_v0 = vld [vmem:[%s92_s25] sm:$0xf]  ;;  %s129_s17 = scalar_lea.vmem [#allocation3], %s1523_s22  ;;  %s209_s23 = scalar_lea.vmem %s2054_s3, %s1524_s21 }
   0xe   : > { %110 = vst [vmem:[%s90_s26] sm:$0xf] %v109_v0  ;;  %v148_v1 = vld [vmem:[%s131_s29] sm:$0xf]  ;;  %s168_s24 = scalar_lea.vmem [#allocation5], %s1523_s22  ;;  %s207_s25 = scalar_lea.vmem [#allocation7], %s1523_s22 }
   0xf   : > { %149 = vst [vmem:[%s129_s17] sm:$0xf] %v148_v1  ;;  %v187_v2 = vld [vmem:[%s170_s16] sm:$0xf] }
  0x10   : > { %188 = vst [vmem:[%s168_s24] sm:$0xf] %v187_v2  ;;  %v226_v3 = vld [vmem:[%s209_s23] sm:$0xf] }
  0x11   : > { %227 = vst [vmem:[%s207_s25] sm:$0xf] %v226_v3 }
  0x12 PF: > { %p1531_p5 = scmp.ge.s32.totalorder %s1661_s11, 1  ;;  %p244_p6 = scmp.lt.s32.totalorder %s1661_s11, 9 }
  0x14   : > { %p245_p7 = pnand %p1531_p5, %p244_p6 }
  0x16   : > { %248 = sbr.rel (%p245_p7) target bundleno = 986 (0x3da), region = 140 }
  0x1b   : > { %s267_s26 = sand.u32 1, %s1740_s12   ;;  %s285_s27 = sand.u32 1, %s1653_s30   ;;  %v349_v4 = vlaneseq  ;;  %v1671_v5 = vmov 0.0  }
  0x1c   : > { %s1777_s28 = sshll.u32 %s267_s26, 2  ;;  %s1779_s18 = sshll.u32 %s285_s27, 3  ;;  %344 = vst [vmem:[#allocation10] sm:$0xff] %v1671_v5  ;;  %345 = vst [vmem:[#allocation12] sm:$0xff] %v1671_v5 }
  0x1d   : > { %346 = vst [vmem:[#allocation14] sm:$0xff] %v1671_v5  ;;  %347 = vst [vmem:[#allocation16] sm:$0xff] %v1671_v5  ;;  %v1781_v6 = vand.u32 127, %v349_v4  ;;  %v1783_v7 = vshrl.u32 %v349_v4, 7  ;;  %s269_s11 = scalar_lea.vmem [#allocation1], %s1777_s28  ;;  %s273_s30 = scalar_lea.vmem [#allocation3], %s1777_s28 }
  0x1e   : > { %v313_v8 = vld [vmem:[%s269_s11] sm:$0xf]  ;;  %v318_v9 = vld [vmem:[%s273_s30] sm:$0xf]  ;;  %s277_s21 = scalar_lea.vmem [#allocation5], %s1777_s28  ;;  %s281_s22 = scalar_lea.vmem [#allocation7], %s1777_s28 }
  0x1f   : > { %314 = vst [vmem:[#allocation0] sm:$0xf] %v313_v8  ;;  %319 = vst [vmem:[#allocation2] sm:$0xf] %v318_v9  ;;  %v323_v10 = vld [vmem:[%s277_s21] sm:$0xf]  ;;  %v351_v6 = vmov %v1781_v6  ;;  %v354_v7 = vmov %v1783_v7 }
  0x20   : > { %v328_v11 = vld [vmem:[%s281_s22] sm:$0xf]  ;;  %324 = vst [vmem:[#allocation4] sm:$0xf] %v323_v10  ;;  %v364_v6 = vmov %v1781_v6  ;;  %v367_v7 = vmov %v1783_v7  ;;  %s332_s29 = smov [#allocation18]  ;;  %s335_s14 = smov [#allocation19]  ;;  %vm358_vm0 = vcmp.eq.s32.totalorder %v354_v7, %v351_v6 }
  0x21   : > { %329 = vst [vmem:[#allocation6] sm:$0xf] %v328_v11  ;;  %vm371_vm1 = vcmp.eq.s32.totalorder %v367_v7, %v364_v6  ;;  %s348_s15 = smov [#allocation10]  ;;  %s361_s16 = smov [#allocation16]  ;;  %vm1411_vm2 = vcmp.lt.s32.totalorder %v1781_v6, 4  ;;  %v1403_v6 = vmov %v1781_v6  ;;  %v1406_v7 = vmov %v1783_v7 }
  0x22   : > { %s338_s17 = smov [#allocation20]  ;;  %s341_s20 = smov [#allocation21]  ;;  %vm1416_vm3 = vcmp.eq.s32.totalorder %v1406_v7, %v1403_v6  ;;  %v1454_v6 = vmov %v1781_v6  ;;  %v1423_v7 = vmov %v1783_v7 }
  0x23   : > { %v355_v12 = vld [vmem:[%s348_s15] sm:$0xf]  ;;  %s1407_s30 = smov [#allocation18]  ;;  %s1424_s21 = smov [#allocation19]  ;;  %v1420_v6 = vmov %v1781_v6  ;;  %v1457_v7 = vmov %v1783_v7 }
  0x24   : > { %v368_v13 = vld [vmem:[%s361_s16] sm:$0xf]  ;;  %v359_v16 = vsel %vm358_vm0, 1.0, %v355_v12  ;;  %s1441_s22 = smov [#allocation20]  ;;  %v1437_v6 = vmov %v1781_v6  ;;  %v1440_v7 = vmov %v1783_v7  ;;  %vm1467_vm4 = vcmp.eq.s32.totalorder %v1457_v7, %v1454_v6 }
  0x25   : > { %v372_v17 = vsel %vm371_vm1, 1.0, %v368_v13  ;;  %360 = vst [vmem:[%s348_s15] sm:$0xf] %v359_v16 }
  0x26   : > { %v333_v14 = vld [vmem:[#allocation0] sm:$0xff]  ;;  %v336_v15 = vld [vmem:[#allocation2] sm:$0xff]  ;;  %373 = vst [vmem:[%s361_s16] sm:$0xf] %v372_v17 }
  0x27   : > { %334 = vst [vmem:[%s332_s29] sm:$0xff] %v333_v14  ;;  %337 = vst [vmem:[%s335_s14] sm:$0xff] %v336_v15  ;;  %v339_v18 = vld [vmem:[#allocation4] sm:$0xff]  ;;  %s1458_s29 = smov [#allocation21] }
  0x28   : > { %v342_v19 = vld [vmem:[#allocation6] sm:$0xff]  ;;  %340 = vst [vmem:[%s338_s17] sm:$0xff] %v339_v18 }
  0x29   : > { %343 = vst [vmem:[%s341_s20] sm:$0xff] %v342_v19 }
  0x2e   : > { %v1413_v20 = vld [vmem:[%s1407_s30] sm:$0xf] }
  0x2f   : > { %v1430_v21 = vld [vmem:[%s1424_s21] sm:$0xf]  ;;  %v1414_v22 = vsel %vm1411_vm2, %v1413_v20, 0.0 }
  0x30   : > { %v1431_v23 = vsel %vm1411_vm2, %v1430_v21, 0.0  ;;  %v1447_v24 = vld [vmem:[%s1441_s22] sm:$0xf]  ;;  %v1415_v26 = vmul.f32 %v1414_v22, %v1414_v22 }
  0x31   : > { %v1464_v25 = vld [vmem:[%s1458_s29] sm:$0xf]  ;;  %v1432_v27 = vmul.f32 %v1431_v23, %v1431_v23  ;;  %v1448_v28 = vsel %vm1411_vm2, %v1447_v24, 0.0 }
  0x32   : > { %v1465_v29 = vsel %vm1411_vm2, %v1464_v25, 0.0  ;;  %v1449_v30 = vmul.f32 %v1448_v28, %v1448_v28  ;;  %v1417_v33 = vsel %vm1416_vm3, 0.0, %v1415_v26 }
  0x33   : > { %v1434_v31 = vadd.f32 %v1432_v27, %v1415_v26  ;;  %v1466_v32 = vmul.f32 %v1465_v29, %v1465_v29  ;;  %v1433_v34 = vadd.f32 %v1432_v27, %v1417_v33 }
  0x35   : > { %v1451_v35 = vadd.f32 %v1449_v30, %v1434_v31  ;;  %v1450_v36 = vadd.f32 %v1449_v30, %v1433_v34  ;;  %v1468_v37 = vsel %vm1467_vm4, 0.0, %v1466_v32 }
  0x37   : > { %v1470_v38 = vadd.f32 %v1466_v32, %v1451_v35  ;;  %v1469_v39 = vadd.f32 %v1468_v37, %v1450_v36 }
  0x39   : > { %1471 = vadd.xlane.f32.xlu0 %v1470_v38 }
  0x3d   : > { %1479 = vadd.xlane.f32.xlu0 %v1469_v39 }
  0xc2   : > { %v1472_v40 = vpop.xlane.xlu0 %1471 }
  0xc3   : > { %v1473_v41 = vrot.slane %v1472_v40, 4 }
  0xc5   : > { %v1474_v42 = vadd.f32 %v1473_v41, %v1472_v40 }
  0xc6   : > { %v1480_v43 = vpop.xlane.xlu0 %1479 }
  0xc7   : > { %v1475_v44 = vrot.slane %v1474_v42, 2  ;;  %v1481_v45 = vrot.slane %v1480_v43, 4 }
  0xc9   : > { %v1482_v46 = vadd.f32 %v1481_v45, %v1480_v43  ;;  %v1476_v47 = vadd.f32 %v1475_v44, %v1474_v42 }
  0xcb   : > { %v1483_v48 = vrot.slane %v1482_v46, 2  ;;  %v1477_v50 = vrot.slane %v1476_v47, 1 }
  0xcd   : > { %v1484_v49 = vadd.f32 %v1483_v48, %v1482_v46  ;;  %v1478_v53 = vadd.f32 %v1477_v50, %v1476_v47 }
  0xcf   : > { %v1485_v51 = vrot.slane %v1484_v49, 1 }
  0xd1   : > { %v1486_v52 = vadd.f32 %v1485_v51, %v1484_v49 }
  0xd3   : > { %1572 = vpush %v1486_v52 }
  0xd4   : > { %1574 = vpush %v1478_v53 }
 0x104   : > { %s1573_s14 = spop %1572 }
 0x105   : > { %s1575_s15 = spop %1574 }
 0x106   : > { %s1489_s16 = smul.f32 1e-10, %s1575_s15 }
 0x108   : > { %p1490_p8 = scmp.le.f32.partialorder %s1573_s14, %s1489_s16 }
 0x109   : > { %s1817_s17 = smov (!%p1490_p8), 0  }
 0x10a   : > { %1493 = sbr.rel (%p1490_p8) target bundleno = 948 (0x3b4), region = 475 }
 0x10f LB: >> { %s1822_s20 = smov 0   ;;  %s1665_s17 = sphi %s1817_s17, %s2063_s17  }
 0x110 LB: >>> { %s478_s30 = smov [#allocation18]  ;;  %v482_v6 = vmov %v1781_v6  ;;  %v485_v7 = vmov %v1783_v7  ;;  %s498_s21 = smov [#allocation19]  ;;  %vm801_vm14 = vcmp.eq.s32.totalorder %v1783_v7, 0  ;;  %vm813_vm15 = vcmp.eq.s32.totalorder %v1783_v7, 3  ;;  %s1669_s20 = sphi %s1822_s20, %s477_s20  }
 0x111   : >>> { %v502_v6 = vmov %v1781_v6  ;;  %v505_v7 = vmov %v1783_v7  ;;  %v486_v54 = vld [vmem:[%s478_s30] sm:$0xf]  ;;  %vm489_vm5 = vcmp.eq.s32.totalorder %v485_v7, %v482_v6  ;;  %s518_s22 = smov [#allocation21]  ;;  %s479_s29 = smov [#allocation22] }
 0x112   : >>> { %vm509_vm6 = vcmp.eq.s32.totalorder %v505_v7, %v502_v6  ;;  %v522_v6 = vmov %v1781_v6  ;;  %v525_v7 = vmov %v1783_v7  ;;  %v490_v55 = vsel %vm489_vm5, %v486_v54, 0.0  ;;  %v506_v56 = vld [vmem:[%s498_s21] sm:$0xf]  ;;  %s499_s14 = smov [#allocation23]  ;;  %s519_s15 = smov [#allocation24] }
 0x113   : >>> { %vm529_vm7 = vcmp.eq.s32.totalorder %v525_v7, %v522_v6  ;;  %v491_v57 = vrot.slane %v490_v55, 4  ;;  %v510_v58 = vsel %vm509_vm6, %v506_v56, 0.0  ;;  %v526_v59 = vld [vmem:[%s518_s22] sm:$0xf]  ;;  %s542_s16 = smov [#allocation23]  ;;  %s540_s30 = smov [#allocation22]  ;;  %v591_v6 = vmov %v1781_v6 }
 0x114   : >>> { %v511_v60 = vrot.slane %v510_v58, 4  ;;  %v530_v61 = vsel %vm529_vm7, %v526_v59, 0.0  ;;  %s544_s21 = smov [#allocation24]  ;;  %s579_s22 = smov [#allocation25]  ;;  %v594_v7 = vmov %v1783_v7  ;;  %v606_v6 = vmov %v1781_v6 }
 0x115   : >>> { %v492_v62 = vadd.f32 %v491_v57, %v490_v55  ;;  %v531_v63 = vrot.slane %v530_v61, 4  ;;  %v609_v7 = vmov %v1783_v7  ;;  %vm596_vm12 = vcmp.eq.s32.totalorder %v594_v7, %v591_v6  ;;  %s1841_s24 = smov [#allocation20]  ;;  %s1847_s23 = smov [#allocation12] }
 0x116   : >>> { %v512_v0 = vadd.f32 %v511_v60, %v510_v58  ;;  %vm611_vm13 = vcmp.eq.s32.totalorder %v609_v7, %v606_v6  ;;  %s841_s11 = smov [#allocation29]  ;;  %s1853_s27 = smov [#allocation16]  ;;  %v627_v55 = vld [vmem:[%s1841_s24] sm:$0xf]  ;;  %v704_v6 = vmov %v1781_v6  ;;  %v707_v7 = vmov %v1783_v7 }
 0x117   : >>> { %v493_v1 = vrot.slane %v492_v62, 2  ;;  %v532_v2 = vadd.f32 %v531_v63, %v530_v61  ;;  %v850_v58 = vld [vmem:[%s1847_s23] sm:$0xf]  ;;  %s619_s26 = smov [#allocation30]  ;;  %s843_s25 = smov [#allocation30]  ;;  %v718_v6 = vmov %v1781_v6  ;;  %v721_v7 = vmov %v1783_v7 }
 0x118   : >>> { %v513_v3 = vrot.slane %v512_v0, 2  ;;  %v852_v61 = vld [vmem:[%s1853_s27] sm:$0xf]  ;;  %vm711_vm0 = vcmp.eq.s32.totalorder %v707_v7, %v704_v6  ;;  %v677_v6 = vmov %v1781_v6  ;;  %v680_v7 = vmov %v1783_v7  ;;  %s477_s20 = sadd.s32 1, %s1669_s20  }
 0x119   : >>> { %v494_v4 = vadd.f32 %v493_v1, %v492_v62  ;;  %v533_v5 = vrot.slane %v532_v2, 2  ;;  %v691_v6 = vmov %v1781_v6  ;;  %v694_v7 = vmov %v1783_v7  ;;  %p474_p9 = scmp.ge.s32.totalorder %s477_s20, 7  }
 0x11a   : >>> { %v514_v8 = vadd.f32 %v513_v3, %v512_v0  ;;  %vm726_vm1 = vcmp.eq.s32.totalorder %v721_v7, %v718_v6  ;;  %vm685_vm3 = vcmp.eq.s32.totalorder %v680_v7, %v677_v6  ;;  %vm698_vm4 = vcmp.eq.s32.totalorder %v694_v7, %v691_v6 }
 0x11b   : >>> { %v495_v9 = vrot.slane %v494_v4, 1  ;;  %v534_v10 = vadd.f32 %v533_v5, %v532_v2  ;;  %vm740_vm5 = vcmp.eq.s32.totalorder %v1781_v6, 0  ;;  %vm744_vm6 = vcmp.eq.s32.totalorder %v1781_v6, 1 }
 0x11c   : >>> { %v515_v11 = vrot.slane %v514_v8, 1  ;;  %vm757_vm7 = vcmp.eq.s32.totalorder %v1781_v6, 3  ;;  %v378_v6 = vmov (%p474_p9), %v1781_v6  ;;  %v381_v7 = vmov (%p474_p9), %v1783_v7 }
 0x11d   : >>> { %v496_v12 = vadd.f32 %v495_v9, %v494_v4  ;;  %v535_v13 = vrot.slane %v534_v10, 1  ;;  %v431_v6 = vmov (%p474_p9), %v1781_v6 }
 0x11e   : >>> { %v516_v14 = vadd.f32 %v515_v11, %v514_v8 }
 0x11f   : >>> { %497 = vst [vmem:[%s479_s29] sm:$0x1] %v496_v12  ;;  %v536_v15 = vadd.f32 %v535_v13, %v534_v10  ;;  %s581_s29 = smov [#allocation26] }
 0x120   : >>> { %517 = vst [vmem:[%s499_s14] sm:$0x1] %v516_v14  ;;  %s538_s14 = smov [#allocation27] }
 0x121   : >>> { %537 = vst [vmem:[%s519_s15] sm:$0x1] %v536_v15  ;;  %s539_s15 = smov [#allocation28]  ;;  %s583_s14 = smov %s538_s14 }
 0x122   : >>> { %s585_s15 = smov %s539_s15 }
 0x126   : >>> { %v541_v18 = vld [vmem:[%s540_s30] sm:$0xff]  ;;  %s602_s30 = smov [#allocation28] }
 0x127   : >>> { %v543_v16 = vld [vmem:[%s542_s16] sm:$0xff]  ;;  %v564_v33 = vand.u32 2147483647, %v541_v18  ;;  %s587_s16 = smov [#allocation27] }
 0x128   : >>> { %v547_v17 = vmul.f32 2.0, %v543_v16  ;;  %v545_v19 = vld [vmem:[%s544_s21] sm:$0xff]  ;;  %v565_v36 = vand.u32 2147483647, %v543_v16  ;;  %s600_s21 = smov [#allocation29] }
 0x129   : >>> { %v546_v20 = vsub.f32 %v545_v19, %v541_v18  ;;  %v566_v34 = vand.u32 2147483647, %v545_v19 }
 0x12a   : >>> { %1623 = vrcp.f32 %v547_v17 }
 0x12b   : >>> { %v567_v35 = vmin.f32 %v564_v33, %v566_v34 }
 0x12d   : >>> { %v568_v37 = vmul.f32 1.1920929e-08, %v567_v35 }
 0x12f   : >>> { %vm569_vm11 = vcmp.le.f32.partialorder %v565_v36, %v568_v37 }
 0x137   : >>> { %v1624_v21 = vpop.eup %1623 }
 0x138   : >>> { %v549_v22 = vmul.f32 %v1624_v21, %v546_v20 }
 0x13a   : >>> { %v551_v23 = vmul.f32 %v549_v22, %v549_v22  ;;  %vm550_vm10 = vcmp.ge.f32.partialorder %v549_v22, 0.0 }
 0x13c   : >>> { %v552_v24 = vadd.f32 1.0, %v551_v23 }
 0x13e   : >>> { %1625 = vrsqrt.f32 %v552_v24  ;;  %vm555_vm8 = vcmp.eq.f32.partialorder %v552_v24, inf  ;;  %v558_v26 = vand.u32 2147483648, %v552_v24  ;;  %vm557_vm9 = vcmp.eq.f32.partialorder %v552_v24, 0.0 }
 0x14b   : >>> { %v1626_v25 = vpop.eup %1625 }
 0x14c   : >>> { %v554_v27 = vmul.f32 %v1626_v25, %v552_v24 }
 0x14e   : >>> { %v556_v28 = vsel %vm555_vm8, %v552_v24, %v554_v27  ;;  %vm393_vm8 = vcmp.eq.s32.totalorder (%p474_p9), %v381_v7, %v378_v6  ;;  %v434_v7 = vmov (%p474_p9), %v1783_v7  ;;  %v397_v6 = vmov (%p474_p9), %v1781_v6 }
 0x14f   : >>> { %v559_v29 = vsel %vm557_vm9, %v558_v26, %v556_v28  ;;  %v400_v7 = vmov (%p474_p9), %v1783_v7  ;;  %v414_v6 = vmov (%p474_p9), %v1781_v6  ;;  %vm446_vm9 = vcmp.eq.s32.totalorder (%p474_p9), %v434_v7, %v431_v6 }
 0x150   : >>> { %v560_v30 = vxor.u32 2147483648, %v559_v29  ;;  %v417_v7 = vmov (%p474_p9), %v1783_v7 }
 0x152   : >>> { %v561_v31 = vsel %vm550_vm10, %v559_v29, %v560_v30 }
 0x153   : >>> { %v562_v32 = vadd.f32 %v561_v31, %v549_v22 }
 0x155   : >>> { %1627 = vrcp.f32 %v562_v32 }
 0x162   : >>> { %v1628_v38 = vpop.eup %1627 }
 0x163   : >>> { %v570_v39 = vsel %vm569_vm11, 0.0, %v1628_v38 }
 0x164   : >>> { %v571_v40 = vmul.f32 %v570_v39, %v570_v39  ;;  %v575_v41 = vmul.f32 %v570_v39, %v543_v16 }
 0x166   : >>> { %v572_v42 = vadd.f32 1.0, %v571_v40  ;;  %v576_v43 = vsub.f32 %v541_v18, %v575_v41  ;;  %v578_v44 = vadd.f32 %v575_v41, %v545_v19 }
 0x168   : >>> { %1629 = vrsqrt.f32 %v572_v42  ;;  %580 = vst [vmem:[%s579_s22] sm:$0xff] %v576_v43  ;;  %582 = vst [vmem:[%s581_s29] sm:$0xff] %v578_v44  ;;  %s617_s22 = smov [#allocation29]  ;;  %s1837_s29 = smov [#allocation18] }
 0x169   : >>> { %v625_v53 = vld [vmem:[%s1837_s29] sm:$0xf] }
 0x175   : >>> { %v1630_v45 = vpop.eup %1629 }
 0x176   : >>> { %584 = vst [vmem:[%s583_s14] sm:$0xff] %v1630_v45  ;;  %v574_v46 = vmul.f32 %v1630_v45, %v570_v39  ;;  %s615_s14 = smov [#allocation30] }
 0x178   : >>> { %586 = vst [vmem:[%s585_s15] sm:$0xff] %v574_v46  ;;  %s1839_s15 = smov [#allocation19] }
 0x179   : >>> { %v626_v54 = vld [vmem:[%s1839_s15] sm:$0xf] }
 0x17d   : >>> { %v588_v47 = vld [vmem:[%s587_s16] ss:$0 sm:$0xff]  ;;  %s1843_s16 = smov [#allocation21] }
 0x17e   : >>> { %v597_v48 = vsel %vm596_vm12, %v588_v47, 0.0  ;;  %v628_v56 = vld [vmem:[%s1843_s16] sm:$0xf] }
 0x17f   : >>> { %598 = vadd.xlane.f32.xlu0 %v597_v48  ;;  %v603_v49 = vld [vmem:[%s602_s30] ss:$0 sm:$0xff]  ;;  %s1845_s30 = smov [#allocation10] }
 0x180   : >>> { %v612_v50 = vsel %vm611_vm13, %v603_v49, 0.0  ;;  %v849_v57 = vld [vmem:[%s1845_s30] sm:$0xf] }
 0x183   : >>> { %613 = vadd.xlane.f32.xlu0 %v612_v50 }
 0x208   : >>> { %v599_v51 = vpop.xlane.xlu0 %598 }
 0x209   : >>> { %601 = vst [vmem:[%s600_s21] sm:$0xff] %v599_v51  ;;  %s1849_s21 = smov [#allocation14] }
 0x20a   : >>> { %v851_v59 = vld [vmem:[%s1849_s21] sm:$0xf] }
 0x20c   : >>> { %v614_v52 = vpop.xlane.xlu0 %613 }
 0x20d   : >>> { %616 = vst [vmem:[%s615_s14] sm:$0xff] %v614_v52  ;;  %s1873_s14 = smov [#allocation21] }
 0x210   : >>> { %v618_v60 = vld [vmem:[%s617_s22] sm:$0xff]  ;;  %s1871_s22 = smov [#allocation20] }
 0x211   : >>> { %v842_v62 = vld [vmem:[%s841_s11] sm:$0xff]  ;;  %v629_v63 = vmul.f32 %v625_v53, %v618_v60  ;;  %v632_v0 = vmul.f32 %v626_v54, %v618_v60  ;;  %v636_v1 = vmul.f32 %v627_v55, %v618_v60  ;;  %v639_v2 = vmul.f32 %v628_v56, %v618_v60  ;;  %s1869_s11 = smov [#allocation10] }
 0x212   : >>> { %v853_v3 = vmul.f32 %v849_v57, %v842_v62  ;;  %v856_v4 = vmul.f32 %v850_v58, %v842_v62  ;;  %v860_v5 = vmul.f32 %v851_v59, %v842_v62  ;;  %v863_v8 = vmul.f32 %v852_v61, %v842_v62 }
 0x214   : >>> { %v620_v9 = vld [vmem:[%s619_s26] sm:$0xff]  ;;  %s647_s26 = smov [#allocation28] }
 0x215   : >>> { %v844_v10 = vld [vmem:[%s843_s25] sm:$0xff]  ;;  %v630_v11 = vmul.f32 %v627_v55, %v620_v9  ;;  %v633_v12 = vmul.f32 %v628_v56, %v620_v9  ;;  %v635_v13 = vmul.f32 %v625_v53, %v620_v9  ;;  %v638_v14 = vmul.f32 %v626_v54, %v620_v9  ;;  %s645_s25 = smov [#allocation27] }
 0x216   : >>> { %v854_v15 = vmul.f32 %v851_v59, %v844_v10  ;;  %v857_v16 = vmul.f32 %v852_v61, %v844_v10  ;;  %v859_v17 = vmul.f32 %v849_v57, %v844_v10  ;;  %v862_v18 = vmul.f32 %v850_v58, %v844_v10  ;;  %v646_v27 = vld [vmem:[%s645_s25] ss:$0 sm:$0xff]  ;;  %s674_s25 = smov [#allocation25] }
 0x217   : >>> { %v631_v19 = vsub.f32 %v629_v63, %v630_v11  ;;  %v634_v20 = vsub.f32 %v632_v0, %v633_v12  ;;  %v637_v21 = vadd.f32 %v636_v1, %v635_v13  ;;  %v640_v22 = vadd.f32 %v639_v2, %v638_v14  ;;  %v648_v28 = vld [vmem:[%s647_s26] ss:$0 sm:$0xff]  ;;  %s673_s26 = smov [#allocation18] }
 0x218   : >>> { %v855_v23 = vsub.f32 %v853_v3, %v854_v15  ;;  %v858_v24 = vsub.f32 %v856_v4, %v857_v16  ;;  %v861_v25 = vadd.f32 %v860_v5, %v859_v17  ;;  %v864_v26 = vadd.f32 %v863_v8, %v862_v18  ;;  %v681_v63 = vld [vmem:[%s674_s25] ss:$0 sm:$0xff]  ;;  %s917_s25 = sadd.s32 (%p474_p9), 1, %s1665_s17  }
 0x219   : >>> { %642 = vst [vmem:[%s1839_s15] sm:$0xf] %v634_v20  ;;  %644 = vst [vmem:[%s1843_s16] sm:$0xf] %v640_v22  ;;  %s1875_s15 = smov [#allocation18]  ;;  %s715_s16 = smov [#allocation26] }
 0x21a   : >>> { %641 = vst [vmem:[%s1837_s29] sm:$0xf] %v631_v19  ;;  %643 = vst [vmem:[%s1841_s24] sm:$0xf] %v637_v21  ;;  %s1877_s24 = smov [#allocation14]  ;;  %s1885_s29 = smov [#allocation19]  ;;  %v722_v59 = vld [vmem:[%s715_s16] ss:$0 sm:$0xff] }
 0x21b   : >>> { %865 = vst [vmem:[%s1845_s30] sm:$0xf] %v855_v23  ;;  %866 = vst [vmem:[%s1847_s23] sm:$0xf] %v858_v24  ;;  %s1879_s23 = smov [#allocation12]  ;;  %s701_s30 = smov [#allocation20] }
 0x21c   : >>> { %867 = vst [vmem:[%s1849_s21] sm:$0xf] %v861_v25  ;;  %868 = vst [vmem:[%s1853_s27] sm:$0xf] %v864_v26  ;;  %s1883_s27 = smov [#allocation16]  ;;  %s714_s21 = smov [#allocation21] }
 0x21d   : >>> { %s817_s16 = smov [#allocation19]  ;;  %p470_p10 = scmp.ge.s32.totalorder (%p474_p9), %s917_s25, 15 }
 0x21e   : >> { %s2063_s17 = smov (%p474_p9), %s917_s25 }
 0x220   : >>> { %v656_v30 = vld [vmem:[%s1873_s14] sm:$0xf] }
 0x221   : >>> { %v655_v29 = vld [vmem:[%s1871_s22] sm:$0xf]  ;;  %v664_v36 = vmul.f32 %v656_v30, %v648_v28  ;;  %v667_v42 = vmul.f32 %v656_v30, %v646_v27 }
 0x222   : >>> { %v653_v31 = vld [vmem:[%s1875_s15] sm:$0xf]  ;;  %v663_v35 = vmul.f32 %v655_v29, %v646_v27  ;;  %v666_v37 = vmul.f32 %v655_v29, %v648_v28 }
 0x223   : >>> { %v871_v32 = vld [vmem:[%s1869_s11] ss:$0 sm:$0xff]  ;;  %v1551_v34 = vld [vmem:[%s1869_s11 + $0x3] ss:$0 sm:$0xff]  ;;  %v657_v48 = vmul.f32 %v653_v31, %v646_v27  ;;  %v660_v49 = vmul.f32 %v653_v31, %v648_v28 }
 0x224   : >>> { %v1550_v33 = vld [vmem:[%s1869_s11 - $0x1] sm:$0xe]  ;;  %v1555_v45 = vld [vmem:[%s1879_s23 + $0x3] ss:$0 sm:$0xff]  ;;  %v665_v47 = vsub.f32 %v663_v35, %v664_v36  ;;  %v668_v53 = vadd.f32 %v667_v42, %v666_v37 }
 0x225   : >>> { %v878_v38 = vsel %vm801_vm14, %v871_v32, %v1550_v33  ;;  %v882_v39 = vld [vmem:[%s1877_s24] ss:$0 sm:$0xff]  ;;  %v1553_v40 = vld [vmem:[%s1877_s24 + $0x1] sm:$0x7] }
 0x226   : >>> { %v895_v41 = vld [vmem:[%s1879_s23] ss:$0 sm:$0xff]  ;;  %881 = vst [vmem:[%s1869_s11] sm:$0xf] %v878_v38  ;;  %v890_v43 = vsel %vm813_vm15, %v1551_v34, %v1553_v40  ;;  %v1557_v51 = vld [vmem:[%s1883_s27 + $0x1] sm:$0x7]  ;;  %671 = vst [vmem:[%s1871_s22] sm:$0xf] %v665_v47 }
 0x227   : >>> { %v1554_v44 = vld [vmem:[%s1879_s23 - $0x1] sm:$0xe]  ;;  %1552 = vst [vmem:[%s1869_s11 + $0x1] sm:$0x1] %v882_v39  ;;  %892 = vst [vmem:[%s1877_s24] sm:$0xf] %v890_v43  ;;  %v914_v54 = vsel %vm813_vm15, %v1555_v45, %v1557_v51  ;;  %s688_s11 = smov [#allocation19] }
 0x228   : >>> { %v906_v46 = vld [vmem:[%s1883_s27] ss:$0 sm:$0xff]  ;;  %v902_v50 = vsel %vm801_vm14, %v895_v41, %v1554_v44  ;;  %672 = vst [vmem:[%s1873_s14] sm:$0xf] %v668_v53  ;;  %s1927_s22 = smov [#allocation20]  ;;  %s1672_s14 = smov 1  }
 0x229   : >>> { %v654_v52 = vld [vmem:[%s1885_s29] sm:$0xf]  ;;  %905 = vst [vmem:[%s1879_s23] sm:$0xf] %v902_v50  ;;  %916 = vst [vmem:[%s1883_s27] sm:$0xf] %v914_v54  ;;  %s730_s24 = smov [#allocation19]  ;;  %s1930_s27 = smov [#allocation21] }
 0x22a   : >>> { %v658_v55 = vmul.f32 %v654_v52, %v648_v28  ;;  %v661_v56 = vmul.f32 %v654_v52, %v646_v27  ;;  %1556 = vst [vmem:[%s1879_s23 + $0x1] sm:$0x1] %v906_v46  ;;  %s1673_s23 = smov 127  }
 0x22c   : >>> { %v659_v57 = vsub.f32 %v657_v48, %v658_v55  ;;  %v662_v58 = vadd.f32 %v661_v56, %v660_v49 }
 0x22d   : >>> { %v708_v60 = vld [vmem:[%s701_s30] sm:$0xf] }
 0x22e   : >>> { %669 = vst [vmem:[%s1875_s15] sm:$0xf] %v659_v57  ;;  %670 = vst [vmem:[%s1885_s29] sm:$0xf] %v662_v58  ;;  %v712_v61 = vsel %vm711_vm0, 0.0, %v708_v60  ;;  %s729_s15 = smov [#allocation18]  ;;  %s793_s29 = smov [#allocation18] }
 0x22f   : >>> { %v723_v62 = vld [vmem:[%s714_s21] sm:$0xf]  ;;  %713 = vst [vmem:[%s701_s30] sm:$0xf] %v712_v61  ;;  %s794_s30 = smov [#allocation20] }
 0x230   : >>> { %v727_v0 = vsel %vm726_vm1, %v722_v59, %v723_v62 }
 0x231   : >>> { %728 = vst [vmem:[%s714_s21] sm:$0xf] %v727_v0  ;;  %s818_s21 = smov [#allocation21] }
 0x235   : >>> { %v682_v1 = vld [vmem:[%s673_s26] sm:$0xf] }
 0x236   : >>> { %v695_v2 = vld [vmem:[%s688_s11] sm:$0xf]  ;;  %v686_v3 = vsel %vm685_vm3, %v681_v63, %v682_v1 }
 0x237   : >>> { %v699_v4 = vsel %vm698_vm4, 0.0, %v695_v2  ;;  %687 = vst [vmem:[%s673_s26] sm:$0xf] %v686_v3  ;;  %v767_v5 = vld [vmem:[%s1927_s22] sm:$0xf]  ;;  %s382_s26 = smov (%p474_p9), [#allocation18] }
 0x238   : >>> { %700 = vst [vmem:[%s688_s11] sm:$0xf] %v699_v4  ;;  %768 = vrot.lane.b32.xlu0 %v767_v5, %s1672_s14  ;;  %v763_v11 = vld [vmem:[%s1930_s27] sm:$0xf]  ;;  %s401_s11 = smov (%p474_p9), [#allocation19] }
 0x239   : >>> { %v784_v12 = vld [vmem:[%s1930_s27] sm:$0xf] }
 0x23a   : >>> { %v766_v30 = vld [vmem:[%s1927_s22] sm:$0xf] }
 0x23e   : >>> { %v735_v8 = vld [vmem:[%s729_s15] sm:$0xf] }
 0x23f   : >>> { %736 = vrot.lane.b32.xlu1 %v735_v8, %s1672_s14  ;;  %v731_v9 = vld [vmem:[%s730_s24] sm:$0xf] }
 0x240   : >>> { %v752_v10 = vld [vmem:[%s730_s24] sm:$0xf] }
 0x241   : >>> { %v734_v18 = vld [vmem:[%s729_s15] sm:$0xf] }
 0x243   : >>> { %732 = vrot.lane.b32.xlu1 %v731_v9, %s1672_s14 }
 0x247   : >>> { %753 = vrot.lane.b32.xlu1 %v752_v10, %s1673_s23 }
 0x24b   : >>> { %764 = vrot.lane.b32.xlu1 %v763_v11, %s1672_s14  ;;  %s435_s14 = smov (%p474_p9), [#allocation21] }
 0x24f   : >>> { %785 = vrot.lane.b32.xlu1 %v784_v12, %s1673_s23 }
 0x2aa   : >>> { %v769_v20 = vpop.permute.xlu0 %768 }
 0x2ab   : >>> { %v773_v22 = vsel %vm740_vm5, %v767_v5, %v769_v20 }
 0x2b1   : >>> { %v737_v13 = vpop.permute.xlu1 %736 }
 0x2b2   : >>> { %v741_v14 = vsel %vm740_vm5, %v735_v8, %v737_v13 }
 0x2b5   : >>> { %v733_v15 = vpop.permute.xlu1 %732 }
 0x2b6   : >>> { %v745_v16 = vsel %vm744_vm6, %v733_v15, %v741_v14 }
 0x2b7   : >>> { %v751_v17 = vsel %vm1411_vm2, %v745_v16, 0.0 }
 0x2b8   : >>> { %759 = vst [vmem:[%s729_s15] sm:$0xf] %v751_v17 }
 0x2b9   : >>> { %v754_v19 = vpop.permute.xlu1 %753 }
 0x2ba   : >>> { %v758_v21 = vsel %vm757_vm7, %v734_v18, %v754_v19 }
 0x2bb   : >>> { %760 = vst [vmem:[%s730_s24] sm:$0xf] %v758_v21 }
 0x2bd   : >>> { %v765_v23 = vpop.permute.xlu1 %764 }
 0x2be   : >>> { %v777_v24 = vsel %vm744_vm6, %v765_v23, %v773_v22 }
 0x2bf   : >>> { %v795_v25 = vld [vmem:[%s793_s29] ss:$0 sm:$0xff]  ;;  %v1543_v27 = vld [vmem:[%s793_s29 + $0x3] ss:$0 sm:$0xff]  ;;  %v783_v29 = vsel %vm1411_vm2, %v777_v24, 0.0 }
 0x2c0   : >>> { %v1542_v26 = vld [vmem:[%s793_s29 - $0x1] sm:$0xe]  ;;  %791 = vst [vmem:[%s1927_s22] sm:$0xf] %v783_v29  ;;  %s418_s22 = smov (%p474_p9), [#allocation20] }
 0x2c1   : >>> { %v802_v28 = vsel %vm801_vm14, %v795_v25, %v1542_v26  ;;  %v786_v31 = vpop.permute.xlu1 %785 }
 0x2c2   : >>> { %805 = vst [vmem:[%s793_s29] sm:$0xf] %v802_v28  ;;  %v819_v32 = vld [vmem:[%s817_s16] ss:$0 sm:$0xff]  ;;  %v1547_v34 = vld [vmem:[%s817_s16 + $0x3] ss:$0 sm:$0xff]  ;;  %v790_v35 = vsel %vm757_vm7, %v766_v30, %v786_v31 }
 0x2c3   : >>> { %v1546_v33 = vld [vmem:[%s817_s16 - $0x1] sm:$0xe]  ;;  %792 = vst [vmem:[%s1930_s27] sm:$0xf] %v790_v35 }
 0x2c4   : >>> { %v826_v36 = vsel %vm801_vm14, %v819_v32, %v1546_v33 }
 0x2c5   : >>> { %829 = vst [vmem:[%s817_s16] sm:$0xf] %v826_v36 }
 0x2c7   : >>> { %v806_v37 = vld [vmem:[%s794_s30] ss:$0 sm:$0xff]  ;;  %v1545_v38 = vld [vmem:[%s794_s30 + $0x1] sm:$0x7] }
 0x2c8   : >>> { %1544 = vst [vmem:[%s793_s29 + $0x1] sm:$0x1] %v806_v37  ;;  %v814_v39 = vsel %vm813_vm15, %v1543_v27, %v1545_v38 }
 0x2c9   : >>> { %816 = vst [vmem:[%s794_s30] sm:$0xf] %v814_v39 }
 0x2ca   : >>> { %v830_v40 = vld [vmem:[%s818_s21] ss:$0 sm:$0xff]  ;;  %v1549_v41 = vld [vmem:[%s818_s21 + $0x1] sm:$0x7] }
 0x2cb   : >>> { %1548 = vst [vmem:[%s817_s16 + $0x1] sm:$0x1] %v830_v40  ;;  %v838_v42 = vsel %vm813_vm15, %v1547_v34, %v1549_v41 }
 0x2cc   : >>> { %840 = vst [vmem:[%s818_s21] sm:$0xf] %v838_v42  ;;  %476 = sbr.rel (!%p474_p9) target bundleno = 272 (0x110), region = 470 }
 0x2cf   : >> { %v388_v43 = vld [vmem:[%s382_s26] sm:$0xf] (%p474_p9) }
 0x2d0   : >> { %v389_v45 = vsel (%p474_p9), %vm1411_vm2, %v388_v43, 0.0  ;;  %v424_v47 = vld [vmem:[%s418_s22] sm:$0xf] (%p474_p9) }
 0x2d1   : >> { %v390_v49 = vmul.f32 %v389_v45, %v389_v45  ;;  %v425_v51 = vsel %vm1411_vm2, %v424_v47, 0.0 }
 0x2d2   : >> { %v407_v44 = vld [vmem:[%s401_s11] sm:$0xf]  ;;  %v426_v53 = vmul.f32 %v425_v51, %v425_v51 }
 0x2d3   : >> { %v408_v46 = vsel %vm1411_vm2, %v407_v44, 0.0  ;;  %v441_v48 = vld [vmem:[%s435_s14] sm:$0xf]  ;;  %v394_v56 = vsel %vm393_vm8, 0.0, %v390_v49 }
 0x2d4   : >> { %v409_v50 = vmul.f32 %v408_v46, %v408_v46  ;;  %v442_v52 = vsel %vm1411_vm2, %v441_v48, 0.0 }
 0x2d5   : >> { %v443_v55 = vmul.f32 %v442_v52, %v442_v52 }
 0x2d6   : >> { %v411_v54 = vadd.f32 %v409_v50, %v390_v49  ;;  %v410_v57 = vadd.f32 %v409_v50, %v394_v56 }
 0x2d7   : >> { %v447_v60 = vsel %vm446_vm9, 0.0, %v443_v55 }
 0x2d8   : >> { %v428_v58 = vadd.f32 %v426_v53, %v411_v54  ;;  %v427_v59 = vadd.f32 %v426_v53, %v410_v57 }
 0x2da   : >> { %v449_v61 = vadd.f32 %v443_v55, %v428_v58  ;;  %v448_v62 = vadd.f32 %v447_v60, %v427_v59 }
 0x2dc   : >> { %450 = vadd.xlane.f32.xlu0 %v449_v61 }
 0x2e0   : >> { %458 = vadd.xlane.f32.xlu0 %v448_v62 }
 0x365   : >> { %v451_v63 = vpop.xlane.xlu0 %450 }
 0x366   : >> { %v452_v0 = vrot.slane %v451_v63, 4 }
 0x368   : >> { %v453_v1 = vadd.f32 %v452_v0, %v451_v63 }
 0x369   : >> { %v459_v2 = vpop.xlane.xlu0 %458 }
 0x36a   : >> { %v454_v3 = vrot.slane %v453_v1, 2  ;;  %v460_v4 = vrot.slane %v459_v2, 4 }
 0x36c   : >> { %v461_v5 = vadd.f32 %v460_v4, %v459_v2  ;;  %v455_v8 = vadd.f32 %v454_v3, %v453_v1 }
 0x36e   : >> { %v462_v9 = vrot.slane %v461_v5, 2  ;;  %v456_v11 = vrot.slane %v455_v8, 1 }
 0x370   : >> { %v463_v10 = vadd.f32 %v462_v9, %v461_v5  ;;  %v457_v14 = vadd.f32 %v456_v11, %v455_v8 }
 0x372   : >> { %v464_v12 = vrot.slane %v463_v10, 1 }
 0x374   : >> { %v465_v13 = vadd.f32 %v464_v12, %v463_v10 }
 0x376   : >> { %1576 = vpush %v465_v13 }
 0x377   : >> { %1578 = vpush %v457_v14 }
 0x3a7   : >> { %s1577_s20 = spop %1576 }
 0x3a8   : >> { %s1579_s15 = spop %1578 }
 0x3a9   : >> { %s468_s24 = smul.f32 1e-10, %s1579_s15 }
 0x3ab   : >> { %p469_p11 = scmp.le.f32.partialorder %s1577_s20, %s468_s24 }
 0x3ad   : >> { %p471_p12 = por %p470_p10, %p469_p11 }
 0x3af   : > { %919 = sbr.rel (!%p471_p12) target bundleno = 271 (0x10f), region = 481 }
 0x3b4 PF: > { %s924_s23 = smov [#allocation18]  ;;  %v928_v6 = vmov %v1781_v6  ;;  %v931_v7 = vmov %v1783_v7  ;;  %v968_v15 = vld [vmem:[#allocation10] sm:$0xf]  ;;  %v976_v16 = vld [vmem:[#allocation12] sm:$0xf]  ;;  %s2064_s17 = scalar_lea.vmem [#allocation11], %s1777_s28 }
 0x3b5   : > { %v948_v6 = vmov %v1781_v6  ;;  %v951_v7 = vmov %v1783_v7  ;;  %v932_v17 = vld [vmem:[%s924_s23] sm:$0xf]  ;;  %vm935_vm10 = vcmp.eq.s32.totalorder %v931_v7, %v928_v6  ;;  %971 = vst [vmem:[%s2064_s17] sm:$0xf] %v968_v15  ;;  %s2065_s27 = scalar_lea.vmem [#allocation13], %s1777_s28  ;;  %v992_v19 = vld [vmem:[#allocation16] sm:$0xf] }
 0x3b6   : > { %vm955_vm11 = vcmp.eq.s32.totalorder %v951_v7, %v948_v6  ;;  %979 = vst [vmem:[%s2065_s27] sm:$0xf] %v976_v16  ;;  %v984_v18 = vld [vmem:[#allocation14] sm:$0xf]  ;;  %v936_v20 = vsel %vm935_vm10, %v932_v17, 0.0  ;;  %s944_s29 = smov [#allocation21]  ;;  %s2066_s16 = scalar_lea.vmem [#allocation15], %s1777_s28 }
 0x3b7   : > { %987 = vst [vmem:[%s2066_s16] sm:$0xf] %v984_v18  ;;  %s2067_s30 = scalar_lea.vmem [#allocation17], %s1777_s28  ;;  %v937_v21 = vrot.slane %v936_v20, 4  ;;  %v952_v22 = vld [vmem:[%s944_s29] sm:$0xf]  ;;  %s920_s21 = sand.u32 7, %s1740_s12  }
 0x3b8   : > { %995 = vst [vmem:[%s2067_s30] sm:$0xf] %v992_v19  ;;  %v956_v23 = vsel %vm955_vm11, %v952_v22, 0.0  ;;  %s2068_s25 = scalar_lea.vmem [#allocation8], %s1779_s18  ;;  %s2069_s11 = scalar_lea.vmem [#allocation9], %s1779_s18 }
 0x3b9   : > { %v938_v24 = vadd.f32 %v937_v21, %v936_v20  ;;  %v957_v25 = vrot.slane %v956_v23, 4  ;;  %s921_s26 = scalar_lea.vmem %s2068_s25, %s920_s21 [#allocation8]  ;;  %s923_s22 = scalar_lea.vmem %s2069_s11, %s920_s21 [#allocation9] }
 0x3ba   : > { %s925_s26 = smov %s921_s26  ;;  %s945_s22 = smov %s923_s22 }
 0x3bb   : > { %v939_v6 = vrot.slane %v938_v24, 2  ;;  %v958_v7 = vadd.f32 %v957_v25, %v956_v23  ;;  %s1023_s14 = sshrl.u32 (%p1754_p3), %s1740_s12, 3  ;;  %s2070_s20 = scalar_lea.vmem (%p1754_p3), [#allocation8], %s1779_s18 }
 0x3bc   : > { %s1564_s15 = sshll.u32 (%p1754_p3), %s1023_s14, 3 }
 0x3bd   : > { %v940_v26 = vadd.f32 %v939_v6, %v938_v24  ;;  %v959_v27 = vrot.slane %v958_v7, 2  ;;  %s1025_s17 = scalar_lea.vmem (%p1754_p3), %s2055_s4, %s1564_s15 }
 0x3bf   : > { %v941_v28 = vrot.slane %v940_v26, 1  ;;  %v960_v29 = vadd.f32 %v959_v27, %v958_v7 }
 0x3c1   : > { %v942_v30 = vadd.f32 %v941_v28, %v940_v26  ;;  %v961_v31 = vrot.slane %v960_v29, 1  ;;  %1022 = sbr.rel (!%p1754_p3) target bundleno = 972 (0x3cc), region = 158 }
 0x3c3   : > { %943 = vst [vmem:[%s925_s26] sm:$0x1] %v942_v30  ;;  %v962_v32 = vadd.f32 %v961_v31, %v960_v29 }
 0x3c5   : > { %963 = vst [vmem:[%s945_s22] sm:$0x1] %v962_v32 }
 0x3ca   : > { %v1054_v33 = vld [vmem:[%s2070_s20] sm:$0xff] }
 0x3cb   : > { %1055 = vst [vmem:[%s1025_s17] sm:$0xff] %v1054_v33 }
 0x3cc PF: > { %1061 = sbr.rel (!%p1754_p3) target bundleno = 980 (0x3d4), region = 196  ;;  %s1062_s27 = sshrl.u32 (%p1754_p3), %s1740_s12, 3 }
 0x3cd   : > { %s2071_s29 = scalar_lea.vmem (%p1754_p3), [#allocation9], %s1779_s18  ;;  %s1565_s16 = sshll.u32 (%p1754_p3), %s1062_s27, 3 }
 0x3ce   : > { %s1064_s25 = scalar_lea.vmem (%p1754_p3), %s2056_s5, %s1565_s16 }
 0x3d2   : > { %v1093_v34 = vld [vmem:[%s2071_s29] sm:$0xff] }
 0x3d3   : > { %1094 = vst [vmem:[%s1064_s25] sm:$0xff] %v1093_v34 }
 0x3d4 PF: > { %s1566_s26 = sshll.u32 %s1740_s12, 2  ;;  %s2072_s19 = scalar_lea.vmem [#allocation11], %s1777_s28 }
 0x3d5   : > { %v1116_v35 = vld [vmem:[%s2072_s19] sm:$0xf]  ;;  %s2073_s11 = scalar_lea.vmem [#allocation13], %s1777_s28  ;;  %s1099_s14 = scalar_lea.vmem %s2057_s6, %s1566_s26 }
 0x3d6   : > { %v1151_v36 = vld [vmem:[%s2073_s11] sm:$0xf]  ;;  %s1134_s24 = scalar_lea.vmem %s2058_s7, %s1566_s26  ;;  %s2074_s23 = scalar_lea.vmem [#allocation15], %s1777_s28  ;;  %1117 = vst [vmem:[%s1099_s14] sm:$0xf] %v1116_v35 }
 0x3d7   : > { %v1186_v37 = vld [vmem:[%s2074_s23] sm:$0xf]  ;;  %s2075_s17 = scalar_lea.vmem [#allocation17], %s1777_s28  ;;  %1152 = vst [vmem:[%s1134_s24] sm:$0xf] %v1151_v36  ;;  %s1169_s29 = scalar_lea.vmem %s2059_s8, %s1566_s26 }
 0x3d8   : > { %v1221_v38 = vld [vmem:[%s2075_s17] sm:$0xf]  ;;  %s1204_s21 = scalar_lea.vmem %s2060_s9, %s1566_s26  ;;  %1187 = vst [vmem:[%s1169_s29] sm:$0xf] %v1186_v37 }
 0x3d9   : > { %1222 = vst [vmem:[%s1204_s21] sm:$0xf] %v1221_v38 }
 0x3da PF: > { %s2076_s25 = sld [smem:[#allocation31_spill]]  ;;  %p13_p13 = scmp.ge.s32.totalorder %s1743_s13, 10  }
 0x3db   : > { %s2077_s30 = smov %s1657_s10  ;;  %s2079_s11 = smov %s1743_s13 }
 0x3dc   :  { %15 = sbr.rel (!%p13_p13) target bundleno = 2 (0x2), region = 492 }
 0x3e0   : > { %s2078_s10 = smov %s2076_s25 }

// kernel: custom-call.5
= control target key start
LH: loop header
LB: loop body
LE: loop exit
PB: predicated region body
PF: predicated region fallthrough
CT: control target
= control target key end

     0   :  { %s1688_s30 = smov 0   ;;  %s1690_s10 = smov 0   ;;  %s1997_s0 = inlined_call_operand.vmem [shape: f32[4,8,8], index: 0, kind: input, shape index: {}]   ;;  %s1998_s1 = inlined_call_operand.vmem [shape: f32[4,8,8], index: 1, kind: input, shape index: {}]   ;;  %s1999_s2 = inlined_call_operand.vmem [shape: f32[4,8,8], index: 2, kind: input, shape index: {}]   ;;  %s2000_s3 = inlined_call_operand.vmem [shape: f32[4,8,8], index: 3, kind: input, shape index: {}]   ;;  %s2001_s4 = inlined_call_operand.vmem [shape: f32[4,8], index: 4, kind: output, shape index: {0}]   ;;  %s2002_s5 = inlined_call_operand.vmem [shape: f32[4,8], index: 5, kind: output, shape index: {1}]   ;;  %s2003_s6 = inlined_call_operand.vmem [shape: f32[4,8,8], index: 6, kind: output, shape index: {2}]   ;;  %s2004_s7 = inlined_call_operand.vmem [shape: f32[4,8,8], index: 7, kind: output, shape index: {3}]   ;;  %s2005_s8 = inlined_call_operand.vmem [shape: f32[4,8,8], index: 8, kind: output, shape index: {4}]   ;;  %s2006_s9 = inlined_call_operand.vmem [shape: f32[4,8,8], index: 9, kind: output, shape index: {5}]  }
   0x1   :  { %s1692_s11 = smov 0  }
   0x2 LB: > { %s1704_s12 = sadd.s32 4294967295, %s1625_s11   ;;  %s1707_s13 = sadd.s32 1, %s1625_s11   ;;  %s1625_s11 = sphi %s1692_s11, %s2015_s11   ;;  %s1621_s10 = sphi %s1690_s10, %s2014_s10   ;;  %s1617_s30 = sphi %s1688_s30, %s2013_s30  }
   0x3   : > { %s20_s14 = sshrl.u32 %s1625_s11, 3  ;;  %s21_s15 = sshrl.u32 %s1707_s13, 3 }
   0x4   : > { %s22_s16 = ssub.s32 %s20_s14, %s21_s15  ;;  %s25_s17 = sadd.s32 1, %s1621_s10 }
   0x5   : > { %p23_p0 = scmp.eq.s32.totalorder %s22_s16, 0  ;;  %p35_p1 = scmp.ne.s32.totalorder %s1621_s10, %s1617_s30 }
   0x6   : > { %p36_p2 = scmp.eq.s32.totalorder %s1704_s12, 3  ;;  %p1486_p4 = scmp.ge.s32.totalorder %s1625_s11, 4 }
   0x7   : > { %s1716_s18 = scalar_select %p23_p0, %s1621_s10, %s25_s17  }
   0x8   : > { %p1718_p3 = por %p36_p2, %p35_p1  ;;  %86 = sbr.rel (%p1486_p4) target bundleno = 18 (0x12), region = 16 }
   0x9   : > { %2007 = sst [smem:[#allocation25_spill]] %s1716_s18  ;;  %s88_s20 = sand.u32 (!%p1486_p4), 1, %s1625_s11  }
   0xa   : > { %s1488_s21 = sshll.u32 (!%p1486_p4), %s1625_s11, 3  ;;  %s1487_s22 = sshll.u32 (!%p1486_p4), %s88_s20, 3 }
   0xb   : > { %s92_s25 = scalar_lea.vmem (!%p1486_p4), %s1997_s0, %s1488_s21  ;;  %s90_s26 = scalar_lea.vmem (!%p1486_p4), [#allocation0], %s1487_s22 }
   0xc   : > { %s131_s29 = scalar_lea.vmem (!%p1486_p4), %s1998_s1, %s1488_s21  ;;  %s170_s16 = scalar_lea.vmem (!%p1486_p4), %s1999_s2, %s1488_s21 }
   0xd   : > { %v121_v0 = vld [vmem:[%s92_s25] sm:$0xff]  ;;  %s129_s17 = scalar_lea.vmem [#allocation1], %s1487_s22  ;;  %s209_s23 = scalar_lea.vmem %s2000_s3, %s1488_s21 }
   0xe   : > { %122 = vst [vmem:[%s90_s26] sm:$0xff] %v121_v0  ;;  %v160_v1 = vld [vmem:[%s131_s29] sm:$0xff]  ;;  %s168_s24 = scalar_lea.vmem [#allocation2], %s1487_s22  ;;  %s207_s25 = scalar_lea.vmem [#allocation3], %s1487_s22 }
   0xf   : > { %161 = vst [vmem:[%s129_s17] sm:$0xff] %v160_v1  ;;  %v199_v2 = vld [vmem:[%s170_s16] sm:$0xff] }
  0x10   : > { %200 = vst [vmem:[%s168_s24] sm:$0xff] %v199_v2  ;;  %v238_v3 = vld [vmem:[%s209_s23] sm:$0xff] }
  0x11   : > { %239 = vst [vmem:[%s207_s25] sm:$0xff] %v238_v3 }
  0x12 PF: > { %p1495_p5 = scmp.ge.s32.totalorder %s1625_s11, 1  ;;  %p244_p6 = scmp.lt.s32.totalorder %s1625_s11, 5 }
  0x14   : > { %p245_p7 = pnand %p1495_p5, %p244_p6 }
  0x16   : > { %248 = sbr.rel (%p245_p7) target bundleno = 987 (0x3db), region = 156 }
  0x1b   : > { %s251_s26 = sand.u32 1, %s1704_s12   ;;  %s285_s27 = sand.u32 1, %s1617_s30   ;;  %v329_v4 = vlaneseq  ;;  %v1635_v11 = vmov 0.0  }
  0x1c   : > { %s1496_s28 = sshll.u32 %s251_s26, 3  ;;  %s1741_s18 = sshll.u32 %s285_s27, 2 }
  0x1d   : > { %v1743_v5 = vand.u32 127, %v329_v4  ;;  %v1745_v6 = vshrl.u32 %v329_v4, 7  ;;  %s253_s21 = scalar_lea.vmem [#allocation0], %s1496_s28  ;;  %s257_s22 = scalar_lea.vmem [#allocation1], %s1496_s28 }
  0x1e   : > { %v313_v7 = vld [vmem:[%s253_s21] sm:$0xff]  ;;  %v316_v8 = vld [vmem:[%s257_s22] sm:$0xff]  ;;  %s261_s29 = scalar_lea.vmem [#allocation2], %s1496_s28  ;;  %s265_s11 = scalar_lea.vmem [#allocation3], %s1496_s28 }
  0x1f   : > { %v319_v9 = vld [vmem:[%s261_s29] sm:$0xff]  ;;  %v322_v10 = vld [vmem:[%s265_s11] sm:$0xff]  ;;  %s1747_s14 = scalar_lea.vmem [#allocation8], %s1496_s28  ;;  %s1750_s30 = scalar_lea.vmem [#allocation9], %s1496_s28  ;;  %v331_v5 = vmov %v1743_v5  ;;  %v334_v6 = vmov %v1745_v6  ;;  %vm1375_vm2 = vcmp.lt.s32.totalorder %v1743_v5, 8 }
  0x20   : > { %324 = vst [vmem:[%s1747_s14] sm:$0xff] %v1635_v11  ;;  %325 = vst [vmem:[%s1750_s30] sm:$0xff] %v1635_v11  ;;  %s312_s15 = smov [#allocation12]  ;;  %s315_s16 = smov [#allocation13]  ;;  %v344_v5 = vmov %v1743_v5  ;;  %v347_v6 = vmov %v1745_v6  ;;  %vm338_vm0 = vcmp.eq.s32.totalorder %v334_v6, %v331_v5 }
  0x21   : > { %s1753_s17 = scalar_lea.vmem [#allocation10], %s1496_s28  ;;  %s1756_s20 = scalar_lea.vmem [#allocation11], %s1496_s28  ;;  %314 = vst [vmem:[%s312_s15] sm:$0xff] %v313_v7  ;;  %317 = vst [vmem:[%s315_s16] sm:$0xff] %v316_v8  ;;  %vm351_vm1 = vcmp.eq.s32.totalorder %v347_v6, %v344_v5  ;;  %v1367_v5 = vmov %v1743_v5  ;;  %v1370_v6 = vmov %v1745_v6 }
  0x22   : > { %326 = vst [vmem:[%s1753_s17] sm:$0xff] %v1635_v11  ;;  %327 = vst [vmem:[%s1756_s20] sm:$0xff] %v1635_v11  ;;  %s318_s23 = smov [#allocation14]  ;;  %s321_s24 = smov [#allocation15]  ;;  %vm1380_vm3 = vcmp.eq.s32.totalorder %v1370_v6, %v1367_v5  ;;  %v1418_v5 = vmov %v1743_v5  ;;  %v1387_v6 = vmov %v1745_v6 }
  0x23   : > { %320 = vst [vmem:[%s318_s23] sm:$0xff] %v319_v9  ;;  %323 = vst [vmem:[%s321_s24] sm:$0xff] %v322_v10  ;;  %s328_s14 = smov %s1747_s14  ;;  %s341_s20 = smov %s1756_s20  ;;  %v1384_v5 = vmov %v1743_v5  ;;  %v1421_v6 = vmov %v1745_v6 }
  0x24   : > { %s287_s25 = scalar_lea.vmem [#allocation5], %s1741_s18  ;;  %s1371_s27 = smov [#allocation12]  ;;  %v1401_v5 = vmov %v1743_v5  ;;  %v1404_v6 = vmov %v1745_v6  ;;  %vm1431_vm4 = vcmp.eq.s32.totalorder %v1421_v6, %v1418_v5 }
  0x25   : > { %s1388_s28 = smov [#allocation13]  ;;  %s1405_s21 = smov [#allocation14] }
  0x26   : > { %s1422_s22 = smov [#allocation15] }
  0x27   : > { %v335_v12 = vld [vmem:[%s328_s14] sm:$0xff] }
  0x28   : > { %v339_v13 = vsel %vm338_vm0, 1.0, %v335_v12  ;;  %v1377_v16 = vld [vmem:[%s1371_s27] sm:$0xff] }
  0x29   : > { %v348_v14 = vld [vmem:[%s341_s20] sm:$0xff]  ;;  %340 = vst [vmem:[%s328_s14] sm:$0xff] %v339_v13  ;;  %v1378_v18 = vsel %vm1375_vm2, %v1377_v16, 0.0 }
  0x2a   : > { %v352_v15 = vsel %vm351_vm1, 1.0, %v348_v14  ;;  %v1394_v17 = vld [vmem:[%s1388_s28] sm:$0xff]  ;;  %v1379_v22 = vmul.f32 %v1378_v18, %v1378_v18 }
  0x2b   : > { %353 = vst [vmem:[%s341_s20] sm:$0xff] %v352_v15  ;;  %v1395_v19 = vsel %vm1375_vm2, %v1394_v17, 0.0  ;;  %v1411_v20 = vld [vmem:[%s1405_s21] sm:$0xff] }
  0x2c   : > { %v1428_v21 = vld [vmem:[%s1422_s22] sm:$0xff]  ;;  %v1396_v23 = vmul.f32 %v1395_v19, %v1395_v19  ;;  %v1412_v24 = vsel %vm1375_vm2, %v1411_v20, 0.0  ;;  %v1381_v29 = vsel %vm1380_vm3, 0.0, %v1379_v22 }
  0x2d   : > { %v1429_v25 = vsel %vm1375_vm2, %v1428_v21, 0.0  ;;  %v1413_v26 = vmul.f32 %v1412_v24, %v1412_v24 }
  0x2e   : > { %v1398_v27 = vadd.f32 %v1396_v23, %v1379_v22  ;;  %v1430_v28 = vmul.f32 %v1429_v25, %v1429_v25  ;;  %v1397_v30 = vadd.f32 %v1396_v23, %v1381_v29 }
  0x30   : > { %v1415_v31 = vadd.f32 %v1413_v26, %v1398_v27  ;;  %v1414_v32 = vadd.f32 %v1413_v26, %v1397_v30  ;;  %v1432_v33 = vsel %vm1431_vm4, 0.0, %v1430_v28 }
  0x32   : > { %v1434_v34 = vadd.f32 %v1430_v28, %v1415_v31  ;;  %v1433_v35 = vadd.f32 %v1432_v33, %v1414_v32 }
  0x34   : > { %1435 = vadd.xlane.f32.xlu0 %v1434_v34 }
  0x38   : > { %1443 = vadd.xlane.f32.xlu0 %v1433_v35 }
  0xbd   : > { %v1436_v36 = vpop.xlane.xlu0 %1435 }
  0xbe   : > { %v1437_v37 = vrot.slane %v1436_v36, 4 }
  0xc0   : > { %v1438_v38 = vadd.f32 %v1437_v37, %v1436_v36 }
  0xc1   : > { %v1444_v39 = vpop.xlane.xlu0 %1443 }
  0xc2   : > { %v1439_v40 = vrot.slane %v1438_v38, 2  ;;  %v1445_v41 = vrot.slane %v1444_v39, 4 }
  0xc4   : > { %v1446_v42 = vadd.f32 %v1445_v41, %v1444_v39  ;;  %v1440_v43 = vadd.f32 %v1439_v40, %v1438_v38 }
  0xc6   : > { %v1447_v44 = vrot.slane %v1446_v42, 2  ;;  %v1441_v46 = vrot.slane %v1440_v43, 1 }
  0xc8   : > { %v1448_v45 = vadd.f32 %v1447_v44, %v1446_v42  ;;  %v1442_v49 = vadd.f32 %v1441_v46, %v1440_v43 }
  0xca   : > { %v1449_v47 = vrot.slane %v1448_v45, 1 }
  0xcc   : > { %v1450_v48 = vadd.f32 %v1449_v47, %v1448_v45 }
  0xce   : > { %1536 = vpush %v1450_v48 }
  0xcf   : > { %1538 = vpush %v1442_v49 }
  0xff   : > { %s1537_s29 = spop %1536 }
 0x100   : > { %s1539_s11 = spop %1538 }
 0x101   : > { %s1453_s15 = smul.f32 1e-10, %s1539_s11 }
 0x103   : > { %p1454_p8 = scmp.le.f32.partialorder %s1537_s29, %s1453_s15 }
 0x104   : > { %s1785_s16 = smov (!%p1454_p8), 0  }
 0x105   : > { %1457 = sbr.rel (%p1454_p8) target bundleno = 943 (0x3af), region = 499 }
 0x10a LB: >> { %s1790_s23 = smov 0   ;;  %s1629_s16 = sphi %s1785_s16, %s2009_s16  }
 0x10b LB: >>> { %s458_s24 = smov [#allocation12]  ;;  %v462_v5 = vmov %v1743_v5  ;;  %v465_v6 = vmov %v1745_v6  ;;  %s478_s27 = smov [#allocation13]  ;;  %vm781_vm14 = vcmp.eq.s32.totalorder %v1745_v6, 0  ;;  %vm793_vm15 = vcmp.eq.s32.totalorder %v1745_v6, 7  ;;  %s1633_s23 = sphi %s1790_s23, %s457_s23  }
 0x10c   : >>> { %v482_v5 = vmov %v1743_v5  ;;  %v485_v6 = vmov %v1745_v6  ;;  %v466_v50 = vld [vmem:[%s458_s24] sm:$0xff]  ;;  %vm469_vm5 = vcmp.eq.s32.totalorder %v465_v6, %v462_v5  ;;  %s498_s28 = smov [#allocation15]  ;;  %s459_s21 = smov [#allocation16] }
 0x10d   : >>> { %vm489_vm6 = vcmp.eq.s32.totalorder %v485_v6, %v482_v5  ;;  %v502_v5 = vmov %v1743_v5  ;;  %v505_v6 = vmov %v1745_v6  ;;  %v470_v51 = vsel %vm469_vm5, %v466_v50, 0.0  ;;  %v486_v52 = vld [vmem:[%s478_s27] sm:$0xff]  ;;  %s479_s22 = smov [#allocation17]  ;;  %s499_s29 = smov [#allocation18] }
 0x10e   : >>> { %vm509_vm7 = vcmp.eq.s32.totalorder %v505_v6, %v502_v5  ;;  %v471_v53 = vrot.slane %v470_v51, 4  ;;  %v490_v54 = vsel %vm489_vm6, %v486_v52, 0.0  ;;  %v506_v55 = vld [vmem:[%s498_s28] sm:$0xff]  ;;  %s522_s11 = smov [#allocation17]  ;;  %s520_s15 = smov [#allocation16]  ;;  %v571_v5 = vmov %v1743_v5 }
 0x10f   : >>> { %v491_v56 = vrot.slane %v490_v54, 4  ;;  %v510_v57 = vsel %vm509_vm7, %v506_v55, 0.0  ;;  %s524_s24 = smov [#allocation18]  ;;  %s559_s27 = smov [#allocation19]  ;;  %v574_v6 = vmov %v1745_v6  ;;  %v586_v5 = vmov %v1743_v5 }
 0x110   : >>> { %v472_v58 = vadd.f32 %v471_v53, %v470_v51  ;;  %v511_v59 = vrot.slane %v510_v57, 4  ;;  %s561_s28 = smov [#allocation20]  ;;  %v589_v6 = vmov %v1745_v6  ;;  %vm576_vm12 = vcmp.eq.s32.totalorder %v574_v6, %v571_v5  ;;  %s1812_s14 = smov %s1747_s14 }
 0x111   : >>> { %v492_v60 = vadd.f32 %v491_v56, %v490_v54  ;;  %vm591_vm13 = vcmp.eq.s32.totalorder %v589_v6, %v586_v5  ;;  %s1815_s30 = smov %s1750_s30  ;;  %s1818_s17 = smov %s1753_s17  ;;  %v829_v52 = vld [vmem:[%s1812_s14] sm:$0xff]  ;;  %v684_v5 = vmov %v1743_v5  ;;  %v687_v6 = vmov %v1745_v6 }
 0x112   : >>> { %v473_v61 = vrot.slane %v472_v58, 2  ;;  %v512_v62 = vadd.f32 %v511_v59, %v510_v57  ;;  %s1822_s20 = smov %s1756_s20  ;;  %v830_v53 = vld [vmem:[%s1815_s30] sm:$0xff]  ;;  %s823_s26 = smov [#allocation24]  ;;  %v657_v5 = vmov %v1743_v5  ;;  %v660_v6 = vmov %v1745_v6 }
 0x113   : >>> { %v493_v63 = vrot.slane %v492_v60, 2  ;;  %v831_v56 = vld [vmem:[%s1818_s17] sm:$0xff]  ;;  %v698_v5 = vmov %v1743_v5  ;;  %v701_v6 = vmov %v1745_v6  ;;  %vm691_vm0 = vcmp.eq.s32.totalorder %v687_v6, %v684_v5  ;;  %s457_s23 = sadd.s32 1, %s1633_s23  }
 0x114   : >>> { %v474_v0 = vadd.f32 %v473_v61, %v472_v58  ;;  %v513_v1 = vrot.slane %v512_v62, 2  ;;  %v832_v57 = vld [vmem:[%s1822_s20] sm:$0xff]  ;;  %v671_v5 = vmov %v1743_v5  ;;  %v674_v6 = vmov %v1745_v6  ;;  %p454_p9 = scmp.ge.s32.totalorder %s457_s23, 15  }
 0x115   : >>> { %v494_v2 = vadd.f32 %v493_v63, %v492_v60  ;;  %vm665_vm1 = vcmp.eq.s32.totalorder %v660_v6, %v657_v5  ;;  %vm706_vm3 = vcmp.eq.s32.totalorder %v701_v6, %v698_v5  ;;  %vm678_vm4 = vcmp.eq.s32.totalorder %v674_v6, %v671_v5 }
 0x116   : >>> { %v475_v3 = vrot.slane %v474_v0, 1  ;;  %v514_v4 = vadd.f32 %v513_v1, %v512_v62  ;;  %vm720_vm5 = vcmp.eq.s32.totalorder %v1743_v5, 0  ;;  %vm724_vm6 = vcmp.eq.s32.totalorder %v1743_v5, 1 }
 0x117   : >>> { %v495_v7 = vrot.slane %v494_v2, 1  ;;  %vm737_vm7 = vcmp.eq.s32.totalorder %v1743_v5, 7  ;;  %v358_v5 = vmov (%p454_p9), %v1743_v5  ;;  %v361_v6 = vmov (%p454_p9), %v1745_v6 }
 0x118   : >>> { %v476_v8 = vadd.f32 %v475_v3, %v474_v0  ;;  %v515_v9 = vrot.slane %v514_v4, 1  ;;  %v411_v5 = vmov (%p454_p9), %v1743_v5 }
 0x119   : >>> { %v496_v10 = vadd.f32 %v495_v7, %v494_v2 }
 0x11a   : >>> { %477 = vst [vmem:[%s459_s21] sm:$0x1] %v476_v8  ;;  %v516_v11 = vadd.f32 %v515_v9, %v514_v4  ;;  %s518_s21 = smov [#allocation21] }
 0x11b   : >>> { %497 = vst [vmem:[%s479_s22] sm:$0x1] %v496_v10  ;;  %s519_s22 = smov [#allocation22]  ;;  %s563_s21 = smov %s518_s21 }
 0x11c   : >>> { %517 = vst [vmem:[%s499_s29] sm:$0x1] %v516_v11  ;;  %s565_s22 = smov %s519_s22  ;;  %s567_s29 = smov [#allocation21] }
 0x121   : >>> { %v521_v14 = vld [vmem:[%s520_s15] sm:$0xff]  ;;  %s580_s15 = smov [#allocation23] }
 0x122   : >>> { %v523_v12 = vld [vmem:[%s522_s11] sm:$0xff]  ;;  %v544_v29 = vand.u32 2147483647, %v521_v14  ;;  %s582_s11 = smov [#allocation22] }
 0x123   : >>> { %v527_v13 = vmul.f32 2.0, %v523_v12  ;;  %v525_v15 = vld [vmem:[%s524_s24] sm:$0xff]  ;;  %v545_v32 = vand.u32 2147483647, %v523_v12  ;;  %s597_s24 = smov [#allocation23] }
 0x124   : >>> { %v526_v16 = vsub.f32 %v525_v15, %v521_v14  ;;  %v546_v30 = vand.u32 2147483647, %v525_v15 }
 0x125   : >>> { %1587 = vrcp.f32 %v527_v13 }
 0x126   : >>> { %v547_v31 = vmin.f32 %v544_v29, %v546_v30 }
 0x128   : >>> { %v548_v33 = vmul.f32 1.1920929e-08, %v547_v31 }
 0x12a   : >>> { %vm549_vm11 = vcmp.le.f32.partialorder %v545_v32, %v548_v33 }
 0x132   : >>> { %v1588_v17 = vpop.eup %1587 }
 0x133   : >>> { %v529_v18 = vmul.f32 %v1588_v17, %v526_v16 }
 0x135   : >>> { %v531_v19 = vmul.f32 %v529_v18, %v529_v18  ;;  %vm530_vm10 = vcmp.ge.f32.partialorder %v529_v18, 0.0 }
 0x137   : >>> { %v532_v20 = vadd.f32 1.0, %v531_v19 }
 0x139   : >>> { %1589 = vrsqrt.f32 %v532_v20  ;;  %vm535_vm8 = vcmp.eq.f32.partialorder %v532_v20, inf  ;;  %v538_v22 = vand.u32 2147483648, %v532_v20  ;;  %vm537_vm9 = vcmp.eq.f32.partialorder %v532_v20, 0.0 }
 0x146   : >>> { %v1590_v21 = vpop.eup %1589 }
 0x147   : >>> { %v534_v23 = vmul.f32 %v1590_v21, %v532_v20 }
 0x149   : >>> { %v536_v24 = vsel %vm535_vm8, %v532_v20, %v534_v23  ;;  %vm373_vm8 = vcmp.eq.s32.totalorder (%p454_p9), %v361_v6, %v358_v5  ;;  %v414_v6 = vmov (%p454_p9), %v1745_v6  ;;  %v377_v5 = vmov (%p454_p9), %v1743_v5 }
 0x14a   : >>> { %v539_v25 = vsel %vm537_vm9, %v538_v22, %v536_v24  ;;  %v380_v6 = vmov (%p454_p9), %v1745_v6  ;;  %v394_v5 = vmov (%p454_p9), %v1743_v5  ;;  %vm426_vm9 = vcmp.eq.s32.totalorder (%p454_p9), %v414_v6, %v411_v5 }
 0x14b   : >>> { %v540_v26 = vxor.u32 2147483648, %v539_v25  ;;  %v397_v6 = vmov (%p454_p9), %v1745_v6 }
 0x14d   : >>> { %v541_v27 = vsel %vm530_vm10, %v539_v25, %v540_v26 }
 0x14e   : >>> { %v542_v28 = vadd.f32 %v541_v27, %v529_v18 }
 0x150   : >>> { %1591 = vrcp.f32 %v542_v28 }
 0x15d   : >>> { %v1592_v34 = vpop.eup %1591 }
 0x15e   : >>> { %v550_v35 = vsel %vm549_vm11, 0.0, %v1592_v34 }
 0x15f   : >>> { %v551_v36 = vmul.f32 %v550_v35, %v550_v35  ;;  %v555_v37 = vmul.f32 %v550_v35, %v523_v12 }
 0x161   : >>> { %v552_v38 = vadd.f32 1.0, %v551_v36  ;;  %v556_v39 = vsub.f32 %v521_v14, %v555_v37  ;;  %v558_v40 = vadd.f32 %v555_v37, %v525_v15 }
 0x163   : >>> { %1593 = vrsqrt.f32 %v552_v38  ;;  %560 = vst [vmem:[%s559_s27] sm:$0xff] %v556_v39  ;;  %562 = vst [vmem:[%s561_s28] sm:$0xff] %v558_v40  ;;  %s1805_s27 = smov [#allocation12]  ;;  %s595_s28 = smov [#allocation24] }
 0x164   : >>> { %v605_v49 = vld [vmem:[%s1805_s27] sm:$0xff] }
 0x170   : >>> { %v1594_v41 = vpop.eup %1593 }
 0x171   : >>> { %564 = vst [vmem:[%s563_s21] sm:$0xff] %v1594_v41  ;;  %v554_v42 = vmul.f32 %v1594_v41, %v550_v35  ;;  %s1807_s21 = smov [#allocation13] }
 0x172   : >>> { %v606_v50 = vld [vmem:[%s1807_s21] sm:$0xff] }
 0x173   : >>> { %566 = vst [vmem:[%s565_s22] sm:$0xff] %v554_v42  ;;  %s1809_s22 = smov [#allocation15] }
 0x174   : >>> { %v608_v51 = vld [vmem:[%s1809_s22] sm:$0xff] }
 0x178   : >>> { %v568_v43 = vld [vmem:[%s567_s29] ss:$0 sm:$0xff]  ;;  %s821_s29 = smov [#allocation23] }
 0x179   : >>> { %v577_v44 = vsel %vm576_vm12, %v568_v43, 0.0 }
 0x17a   : >>> { %578 = vadd.xlane.f32.xlu0 %v577_v44  ;;  %v583_v45 = vld [vmem:[%s582_s11] ss:$0 sm:$0xff]  ;;  %s1824_s11 = smov [#allocation14] }
 0x17b   : >>> { %v592_v46 = vsel %vm591_vm13, %v583_v45, 0.0  ;;  %v607_v58 = vld [vmem:[%s1824_s11] sm:$0xff] }
 0x17e   : >>> { %593 = vadd.xlane.f32.xlu0 %v592_v46 }
 0x203   : >>> { %v579_v47 = vpop.xlane.xlu0 %578 }
 0x204   : >>> { %581 = vst [vmem:[%s580_s15] sm:$0xff] %v579_v47  ;;  %s599_s15 = smov [#allocation24] }
 0x207   : >>> { %v594_v48 = vpop.xlane.xlu0 %593 }
 0x208   : >>> { %596 = vst [vmem:[%s595_s28] sm:$0xff] %v594_v48  ;;  %s1851_s28 = smov [#allocation14] }
 0x20b   : >>> { %v598_v54 = vld [vmem:[%s597_s24] sm:$0xff]  ;;  %s627_s24 = smov [#allocation22] }
 0x20c   : >>> { %v822_v55 = vld [vmem:[%s821_s29] sm:$0xff]  ;;  %v609_v59 = vmul.f32 %v605_v49, %v598_v54  ;;  %v612_v60 = vmul.f32 %v606_v50, %v598_v54  ;;  %v619_v61 = vmul.f32 %v608_v51, %v598_v54  ;;  %v616_v4 = vmul.f32 %v607_v58, %v598_v54  ;;  %s654_s29 = smov [#allocation19] }
 0x20d   : >>> { %v833_v62 = vmul.f32 %v829_v52, %v822_v55  ;;  %v836_v63 = vmul.f32 %v830_v53, %v822_v55  ;;  %v840_v0 = vmul.f32 %v831_v56, %v822_v55  ;;  %v843_v1 = vmul.f32 %v832_v57, %v822_v55  ;;  %v628_v24 = vld [vmem:[%s627_s24] ss:$0 sm:$0xff]  ;;  %s694_s24 = smov [#allocation15] }
 0x20e   : >>> { %v661_v55 = vld [vmem:[%s654_s29] ss:$0 sm:$0xff]  ;;  %s710_s29 = smov [#allocation13] }
 0x20f   : >>> { %v600_v2 = vld [vmem:[%s599_s15] sm:$0xff]  ;;  %s681_s15 = smov [#allocation14] }
 0x210   : >>> { %v824_v3 = vld [vmem:[%s823_s26] sm:$0xff]  ;;  %v613_v7 = vmul.f32 %v608_v51, %v600_v2  ;;  %v615_v8 = vmul.f32 %v605_v49, %v600_v2  ;;  %v618_v9 = vmul.f32 %v606_v50, %v600_v2  ;;  %v610_v14 = vmul.f32 %v607_v58, %v600_v2  ;;  %s625_s26 = smov [#allocation21] }
 0x211   : >>> { %v834_v10 = vmul.f32 %v831_v56, %v824_v3  ;;  %v837_v11 = vmul.f32 %v832_v57, %v824_v3  ;;  %v839_v12 = vmul.f32 %v829_v52, %v824_v3  ;;  %v842_v13 = vmul.f32 %v830_v53, %v824_v3  ;;  %v626_v23 = vld [vmem:[%s625_s26] ss:$0 sm:$0xff]  ;;  %s653_s26 = smov [#allocation12] }
 0x212   : >>> { %v614_v15 = vsub.f32 %v612_v60, %v613_v7  ;;  %v620_v16 = vadd.f32 %v619_v61, %v618_v9  ;;  %v617_v18 = vadd.f32 %v616_v4, %v615_v8  ;;  %v611_v22 = vsub.f32 %v609_v59, %v610_v14 }
 0x213   : >>> { %v835_v17 = vsub.f32 %v833_v62, %v834_v10  ;;  %v838_v19 = vsub.f32 %v836_v63, %v837_v11  ;;  %v841_v20 = vadd.f32 %v840_v0, %v839_v12  ;;  %v844_v21 = vadd.f32 %v843_v1, %v842_v13 }
 0x214   : >>> { %622 = vst [vmem:[%s1807_s21] sm:$0xff] %v614_v15  ;;  %624 = vst [vmem:[%s1809_s22] sm:$0xff] %v620_v16  ;;  %s1853_s21 = smov [#allocation15]  ;;  %s1857_s22 = smov [#allocation13] }
 0x215   : >>> { %845 = vst [vmem:[%s1812_s14] sm:$0xff] %v835_v17  ;;  %623 = vst [vmem:[%s1824_s11] sm:$0xff] %v617_v18  ;;  %s849_s14 = smov %s1747_s14  ;;  %s695_s11 = smov [#allocation20] }
 0x216   : >>> { %846 = vst [vmem:[%s1815_s30] sm:$0xff] %v838_v19  ;;  %847 = vst [vmem:[%s1818_s17] sm:$0xff] %v841_v20  ;;  %s850_s17 = smov %s1753_s17  ;;  %s1844_s30 = smov %s1750_s30  ;;  %v702_v56 = vld [vmem:[%s695_s11] ss:$0 sm:$0xff] }
 0x217   : >>> { %848 = vst [vmem:[%s1822_s20] sm:$0xff] %v844_v21  ;;  %621 = vst [vmem:[%s1805_s27] sm:$0xff] %v611_v22  ;;  %s1847_s20 = smov %s1756_s20  ;;  %s1855_s27 = smov [#allocation12] }
 0x218   : >>> { %s1637_s11 = smov 127  }
 0x21b   : >>> { %v636_v39 = vld [vmem:[%s1853_s21] sm:$0xff] }
 0x21c   : >>> { %v851_v25 = vld [vmem:[%s849_s14] ss:$0 sm:$0xff]  ;;  %v1515_v27 = vld [vmem:[%s849_s14 + $0x7] ss:$0 sm:$0xff]  ;;  %v644_v42 = vmul.f32 %v636_v39, %v628_v24  ;;  %v647_v46 = vmul.f32 %v636_v39, %v626_v23 }
 0x21d   : >>> { %v1514_v26 = vld [vmem:[%s849_s14 - $0x1] sm:$0xfe]  ;;  %v1519_v34 = vld [vmem:[%s1844_s30 + $0x7] ss:$0 sm:$0xff] }
 0x21e   : >>> { %v858_v28 = vsel %vm781_vm14, %v851_v25, %v1514_v26  ;;  %v862_v29 = vld [vmem:[%s850_s17] ss:$0 sm:$0xff]  ;;  %v1517_v30 = vld [vmem:[%s850_s17 + $0x1] sm:$0x7f] }
 0x21f   : >>> { %v875_v31 = vld [vmem:[%s1844_s30] ss:$0 sm:$0xff]  ;;  %861 = vst [vmem:[%s849_s14] sm:$0xff] %v858_v28  ;;  %v870_v32 = vsel %vm793_vm15, %v1515_v27, %v1517_v30  ;;  %v1521_v37 = vld [vmem:[%s1847_s20 + $0x1] sm:$0x7f] }
 0x220   : >>> { %v1518_v33 = vld [vmem:[%s1844_s30 - $0x1] sm:$0xfe]  ;;  %1516 = vst [vmem:[%s849_s14 + $0x1] sm:$0x1] %v862_v29  ;;  %872 = vst [vmem:[%s850_s17] sm:$0xff] %v870_v32  ;;  %v894_v40 = vsel %vm793_vm15, %v1519_v34, %v1521_v37 }
 0x221   : >>> { %v886_v35 = vld [vmem:[%s1847_s20] ss:$0 sm:$0xff]  ;;  %v882_v36 = vsel %vm781_vm14, %v875_v31, %v1518_v33 }
 0x222   : >>> { %v635_v38 = vld [vmem:[%s1851_s28] sm:$0xff]  ;;  %885 = vst [vmem:[%s1844_s30] sm:$0xff] %v882_v36  ;;  %896 = vst [vmem:[%s1847_s20] sm:$0xff] %v894_v40 }
 0x223   : >>> { %v643_v41 = vmul.f32 %v635_v38, %v626_v23  ;;  %v646_v43 = vmul.f32 %v635_v38, %v628_v24  ;;  %v633_v44 = vld [vmem:[%s1855_s27] sm:$0xff]  ;;  %1520 = vst [vmem:[%s1844_s30 + $0x1] sm:$0x1] %v886_v35 }
 0x224   : >>> { %v634_v45 = vld [vmem:[%s1857_s22] sm:$0xff]  ;;  %v637_v47 = vmul.f32 %v633_v44, %v626_v23  ;;  %v640_v49 = vmul.f32 %v633_v44, %v628_v24 }
 0x225   : >>> { %v638_v48 = vmul.f32 %v634_v45, %v628_v24  ;;  %v645_v50 = vsub.f32 %v643_v41, %v644_v42  ;;  %v641_v51 = vmul.f32 %v634_v45, %v626_v23  ;;  %v648_v52 = vadd.f32 %v647_v46, %v646_v43 }
 0x227   : >>> { %v639_v53 = vsub.f32 %v637_v47, %v638_v48  ;;  %651 = vst [vmem:[%s1851_s28] sm:$0xff] %v645_v50  ;;  %v642_v54 = vadd.f32 %v641_v51, %v640_v49  ;;  %652 = vst [vmem:[%s1853_s21] sm:$0xff] %v648_v52  ;;  %s668_s28 = smov [#allocation13]  ;;  %s1891_s21 = smov [#allocation14] }
 0x229   : >>> { %649 = vst [vmem:[%s1855_s27] sm:$0xff] %v639_v53  ;;  %650 = vst [vmem:[%s1857_s22] sm:$0xff] %v642_v54  ;;  %s709_s27 = smov [#allocation12]  ;;  %s1636_s22 = smov 1  }
 0x22e   : >>> { %v688_v57 = vld [vmem:[%s681_s15] sm:$0xff] }
 0x22f   : >>> { %v692_v58 = vsel %vm691_vm0, 0.0, %v688_v57  ;;  %v703_v60 = vld [vmem:[%s694_s24] sm:$0xff] }
 0x230   : >>> { %v662_v59 = vld [vmem:[%s653_s26] sm:$0xff]  ;;  %693 = vst [vmem:[%s681_s15] sm:$0xff] %v692_v58  ;;  %v707_v63 = vsel %vm706_vm3, %v702_v56, %v703_v60  ;;  %s1894_s15 = smov [#allocation15] }
 0x231   : >>> { %v666_v61 = vsel %vm665_vm1, %v661_v55, %v662_v59  ;;  %v675_v62 = vld [vmem:[%s668_s28] sm:$0xff]  ;;  %708 = vst [vmem:[%s694_s24] sm:$0xff] %v707_v63  ;;  %s797_s24 = smov [#allocation13] }
 0x232   : >>> { %667 = vst [vmem:[%s653_s26] sm:$0xff] %v666_v61  ;;  %v679_v0 = vsel %vm678_vm4, 0.0, %v675_v62  ;;  %s773_s26 = smov [#allocation12] }
 0x233   : >>> { %680 = vst [vmem:[%s668_s28] sm:$0xff] %v679_v0  ;;  %s774_s28 = smov [#allocation14] }
 0x237   : >>> { %v747_v1 = vld [vmem:[%s1891_s21] sm:$0xff] }
 0x238   : >>> { %748 = vrot.lane.b32.xlu0 %v747_v1, %s1636_s22  ;;  %v743_v4 = vld [vmem:[%s1894_s15] sm:$0xff] }
 0x239   : >>> { %v715_v2 = vld [vmem:[%s709_s27] sm:$0xff] }
 0x23a   : >>> { %716 = vrot.lane.b32.xlu1 %v715_v2, %s1636_s22  ;;  %v711_v3 = vld [vmem:[%s710_s29] sm:$0xff] }
 0x23e   : >>> { %712 = vrot.lane.b32.xlu1 %v711_v3, %s1636_s22 }
 0x242   : >>> { %733 = vrot.lane.b32.xlu1 %v711_v3, %s1637_s11 }
 0x246   : >>> { %744 = vrot.lane.b32.xlu1 %v743_v4, %s1636_s22  ;;  %s362_s22 = smov (%p454_p9), [#allocation12] }
 0x24a   : >>> { %765 = vrot.lane.b32.xlu1 %v743_v4, %s1637_s11  ;;  %s398_s11 = smov (%p454_p9), [#allocation14] }
 0x2aa   : >>> { %v749_v13 = vpop.permute.xlu0 %748 }
 0x2ab   : >>> { %v753_v15 = vsel %vm720_vm5, %v747_v1, %v749_v13 }
 0x2ac   : >>> { %v717_v7 = vpop.permute.xlu1 %716 }
 0x2ad   : >>> { %v721_v8 = vsel %vm720_vm5, %v715_v2, %v717_v7 }
 0x2b0   : >>> { %v713_v9 = vpop.permute.xlu1 %712 }
 0x2b1   : >>> { %v725_v10 = vsel %vm724_vm6, %v713_v9, %v721_v8 }
 0x2b2   : >>> { %v731_v11 = vsel %vm1375_vm2, %v725_v10, 0.0 }
 0x2b3   : >>> { %739 = vst [vmem:[%s709_s27] sm:$0xff] %v731_v11  ;;  %s798_s27 = smov [#allocation15] }
 0x2b4   : >>> { %v734_v12 = vpop.permute.xlu1 %733 }
 0x2b5   : >>> { %v738_v14 = vsel %vm737_vm7, %v715_v2, %v734_v12 }
 0x2b6   : >>> { %740 = vst [vmem:[%s710_s29] sm:$0xff] %v738_v14  ;;  %s381_s29 = smov (%p454_p9), [#allocation13] }
 0x2b8   : >>> { %v745_v16 = vpop.permute.xlu1 %744 }
 0x2b9   : >>> { %v757_v17 = vsel %vm724_vm6, %v745_v16, %v753_v15 }
 0x2ba   : >>> { %v775_v18 = vld [vmem:[%s773_s26] ss:$0 sm:$0xff]  ;;  %v1507_v20 = vld [vmem:[%s773_s26 + $0x7] ss:$0 sm:$0xff]  ;;  %v763_v22 = vsel %vm1375_vm2, %v757_v17, 0.0 }
 0x2bb   : >>> { %v1506_v19 = vld [vmem:[%s773_s26 - $0x1] sm:$0xfe]  ;;  %771 = vst [vmem:[%s1891_s21] sm:$0xff] %v763_v22  ;;  %s897_s21 = sadd.s32 (%p454_p9), 1, %s1629_s16  }
 0x2bc   : >>> { %v782_v21 = vsel %vm781_vm14, %v775_v18, %v1506_v19  ;;  %v766_v23 = vpop.permute.xlu1 %765  ;;  %p450_p10 = scmp.ge.s32.totalorder (%p454_p9), %s897_s21, 15  ;;  %s2009_s16 = smov (%p454_p9), %s897_s21 }
 0x2bd   : >>> { %785 = vst [vmem:[%s773_s26] sm:$0xff] %v782_v21  ;;  %v799_v24 = vld [vmem:[%s797_s24] ss:$0 sm:$0xff]  ;;  %v1511_v26 = vld [vmem:[%s797_s24 + $0x7] ss:$0 sm:$0xff]  ;;  %v770_v27 = vsel %vm737_vm7, %v747_v1, %v766_v23 }
 0x2be   : >>> { %v1510_v25 = vld [vmem:[%s797_s24 - $0x1] sm:$0xfe]  ;;  %772 = vst [vmem:[%s1894_s15] sm:$0xff] %v770_v27  ;;  %s415_s15 = smov (%p454_p9), [#allocation15] }
 0x2bf   : >>> { %v806_v28 = vsel %vm781_vm14, %v799_v24, %v1510_v25 }
 0x2c0   : >>> { %809 = vst [vmem:[%s797_s24] sm:$0xff] %v806_v28 }
 0x2c2   : >>> { %v786_v29 = vld [vmem:[%s774_s28] ss:$0 sm:$0xff]  ;;  %v1509_v30 = vld [vmem:[%s774_s28 + $0x1] sm:$0x7f] }
 0x2c3   : >>> { %1508 = vst [vmem:[%s773_s26 + $0x1] sm:$0x1] %v786_v29  ;;  %v794_v31 = vsel %vm793_vm15, %v1507_v20, %v1509_v30 }
 0x2c4   : >>> { %796 = vst [vmem:[%s774_s28] sm:$0xff] %v794_v31 }
 0x2c5   : >>> { %v810_v32 = vld [vmem:[%s798_s27] ss:$0 sm:$0xff]  ;;  %v1513_v33 = vld [vmem:[%s798_s27 + $0x1] sm:$0x7f] }
 0x2c6   : >>> { %1512 = vst [vmem:[%s797_s24 + $0x1] sm:$0x1] %v810_v32  ;;  %v818_v34 = vsel %vm793_vm15, %v1511_v26, %v1513_v33 }
 0x2c7   : >>> { %820 = vst [vmem:[%s798_s27] sm:$0xff] %v818_v34  ;;  %456 = sbr.rel (!%p454_p9) target bundleno = 267 (0x10b), region = 494 }
 0x2ca   : >> { %v368_v35 = vld [vmem:[%s362_s22] sm:$0xff] (%p454_p9) }
 0x2cb   : >> { %v369_v37 = vsel (%p454_p9), %vm1375_vm2, %v368_v35, 0.0  ;;  %v404_v39 = vld [vmem:[%s398_s11] sm:$0xff] (%p454_p9) }
 0x2cc   : >> { %v370_v41 = vmul.f32 %v369_v37, %v369_v37  ;;  %v405_v43 = vsel %vm1375_vm2, %v404_v39, 0.0 }
 0x2cd   : >> { %v387_v36 = vld [vmem:[%s381_s29] sm:$0xff]  ;;  %v406_v45 = vmul.f32 %v405_v43, %v405_v43 }
 0x2ce   : >> { %v388_v38 = vsel %vm1375_vm2, %v387_v36, 0.0  ;;  %v421_v40 = vld [vmem:[%s415_s15] sm:$0xff]  ;;  %v374_v48 = vsel %vm373_vm8, 0.0, %v370_v41 }
 0x2cf   : >> { %v389_v42 = vmul.f32 %v388_v38, %v388_v38  ;;  %v422_v44 = vsel %vm1375_vm2, %v421_v40, 0.0 }
 0x2d0   : >> { %v423_v47 = vmul.f32 %v422_v44, %v422_v44 }
 0x2d1   : >> { %v391_v46 = vadd.f32 %v389_v42, %v370_v41  ;;  %v390_v49 = vadd.f32 %v389_v42, %v374_v48 }
 0x2d2   : >> { %v427_v52 = vsel %vm426_vm9, 0.0, %v423_v47 }
 0x2d3   : >> { %v408_v50 = vadd.f32 %v406_v45, %v391_v46  ;;  %v407_v51 = vadd.f32 %v406_v45, %v390_v49 }
 0x2d5   : >> { %v429_v53 = vadd.f32 %v423_v47, %v408_v50  ;;  %v428_v54 = vadd.f32 %v427_v52, %v407_v51 }
 0x2d7   : >> { %430 = vadd.xlane.f32.xlu0 %v429_v53 }
 0x2db   : >> { %438 = vadd.xlane.f32.xlu0 %v428_v54 }
 0x360   : >> { %v431_v55 = vpop.xlane.xlu0 %430 }
 0x361   : >> { %v432_v56 = vrot.slane %v431_v55, 4 }
 0x363   : >> { %v433_v57 = vadd.f32 %v432_v56, %v431_v55 }
 0x364   : >> { %v439_v58 = vpop.xlane.xlu0 %438 }
 0x365   : >> { %v434_v59 = vrot.slane %v433_v57, 2  ;;  %v440_v60 = vrot.slane %v439_v58, 4 }
 0x367   : >> { %v441_v61 = vadd.f32 %v440_v60, %v439_v58  ;;  %v435_v62 = vadd.f32 %v434_v59, %v433_v57 }
 0x369   : >> { %v442_v63 = vrot.slane %v441_v61, 2  ;;  %v436_v1 = vrot.slane %v435_v62, 1 }
 0x36b   : >> { %v443_v0 = vadd.f32 %v442_v63, %v441_v61  ;;  %v437_v4 = vadd.f32 %v436_v1, %v435_v62 }
 0x36d   : >> { %v444_v2 = vrot.slane %v443_v0, 1 }
 0x36f   : >> { %v445_v3 = vadd.f32 %v444_v2, %v443_v0 }
 0x371   : >> { %1540 = vpush %v445_v3 }
 0x372   : >> { %1542 = vpush %v437_v4 }
 0x3a2   : >> { %s1541_s23 = spop %1540 }
 0x3a3   : >> { %s1543_s26 = spop %1542 }
 0x3a4   : >> { %s448_s24 = smul.f32 1e-10, %s1543_s26 }
 0x3a6   : >> { %p449_p11 = scmp.le.f32.partialorder %s1541_s23, %s448_s24 }
 0x3a8   : >> { %p451_p12 = por %p450_p10, %p449_p11 }
 0x3aa   : > { %899 = sbr.rel (!%p451_p12) target bundleno = 266 (0x10a), region = 505 }
 0x3af PF: > { %s904_s28 = smov [#allocation12]  ;;  %v908_v5 = vmov %v1743_v5  ;;  %v911_v6 = vmov %v1745_v6  ;;  %s924_s27 = smov [#allocation15] }
 0x3b0   : > { %v928_v5 = vmov %v1743_v5  ;;  %v931_v6 = vmov %v1745_v6  ;;  %v912_v7 = vld [vmem:[%s904_s28] sm:$0xff]  ;;  %vm915_vm10 = vcmp.eq.s32.totalorder %v911_v6, %v908_v5  ;;  %s900_s16 = sand.u32 7, %s1704_s12   ;;  %s2010_s29 = scalar_lea.vmem [#allocation7], %s1741_s18 }
 0x3b1   : > { %vm935_vm11 = vcmp.eq.s32.totalorder %v931_v6, %v928_v5  ;;  %v916_v8 = vsel %vm915_vm10, %v912_v7, 0.0  ;;  %v932_v10 = vld [vmem:[%s924_s27] sm:$0xff]  ;;  %s901_s21 = scalar_lea.vmem [#allocation4], %s900_s16  ;;  %s903_s22 = scalar_lea.vmem [#allocation6], %s900_s16 }
 0x3b2   : > { %v917_v9 = vrot.slane %v916_v8, 4  ;;  %v936_v11 = vsel %vm935_vm11, %v932_v10, 0.0  ;;  %s905_s21 = smov %s901_s21  ;;  %s925_s22 = smov %s903_s22 }
 0x3b3   : > { %v937_v13 = vrot.slane %v936_v11, 4  ;;  %s987_s11 = sshrl.u32 (%p1718_p3), %s1704_s12, 3 }
 0x3b4   : > { %v918_v12 = vadd.f32 %v917_v9, %v916_v8  ;;  %s1528_s15 = sshll.u32 (%p1718_p3), %s987_s11, 2 }
 0x3b5   : > { %v938_v15 = vadd.f32 %v937_v13, %v936_v11  ;;  %s989_s24 = scalar_lea.vmem (%p1718_p3), %s2001_s4, %s1528_s15 }
 0x3b6   : > { %v919_v14 = vrot.slane %v918_v12, 2 }
 0x3b7   : > { %v939_v17 = vrot.slane %v938_v15, 2 }
 0x3b8   : > { %v920_v16 = vadd.f32 %v919_v14, %v918_v12 }
 0x3b9   : > { %v940_v19 = vadd.f32 %v939_v17, %v938_v15 }
 0x3ba   : > { %v921_v18 = vrot.slane %v920_v16, 1 }
 0x3bb   : > { %v941_v5 = vrot.slane %v940_v19, 1 }
 0x3bc   : > { %v922_v20 = vadd.f32 %v921_v18, %v920_v16 }
 0x3bd   : > { %v942_v6 = vadd.f32 %v941_v5, %v940_v19 }
 0x3be   : > { %923 = vst [vmem:[%s905_s21] sm:$0x1] %v922_v20 }
 0x3bf   : > { %943 = vst [vmem:[%s925_s22] sm:$0x1] %v942_v6 }
 0x3c3   : > { %986 = sbr.rel (!%p1718_p3) target bundleno = 975 (0x3cf), region = 174 }
 0x3c5   : > { %v948_v21 = vld [vmem:[#allocation4] sm:$0xf] }
 0x3c6   : > { %951 = vst [vmem:[%s287_s25] sm:$0xf] %v948_v21  ;;  %v956_v22 = vld [vmem:[#allocation6] sm:$0xf] }
 0x3c7   : > { %959 = vst [vmem:[%s2010_s29] sm:$0xf] %v956_v22 }
 0x3cd   : > { %v1006_v23 = vld [vmem:[%s287_s25] sm:$0xf] }
 0x3ce   : > { %1007 = vst [vmem:[%s989_s24] sm:$0xf] %v1006_v23 }
 0x3cf PF: > { %1025 = sbr.rel (!%p1718_p3) target bundleno = 983 (0x3d7), region = 208  ;;  %s1026_s28 = sshrl.u32 (%p1718_p3), %s1704_s12, 3 }
 0x3d0   : > { %s2011_s27 = scalar_lea.vmem (%p1718_p3), [#allocation7], %s1741_s18  ;;  %s1529_s16 = sshll.u32 (%p1718_p3), %s1026_s28, 2 }
 0x3d1   : > { %s1028_s25 = scalar_lea.vmem (%p1718_p3), %s2002_s5, %s1529_s16 }
 0x3d5   : > { %v1045_v24 = vld [vmem:[%s2011_s27] sm:$0xf] }
 0x3d6   : > { %1046 = vst [vmem:[%s1028_s25] sm:$0xf] %v1045_v24 }
 0x3d7 PF: > { %s1530_s29 = sshll.u32 %s1704_s12, 3  ;;  %v1092_v25 = vld [vmem:[%s1747_s14] sm:$0xff]  ;;  %v1127_v26 = vld [vmem:[%s1750_s30] sm:$0xff] }
 0x3d8   : > { %v1162_v27 = vld [vmem:[%s1753_s17] sm:$0xff]  ;;  %s1063_s18 = scalar_lea.vmem %s2003_s6, %s1530_s29  ;;  %s1098_s26 = scalar_lea.vmem %s2004_s7, %s1530_s29  ;;  %v1197_v28 = vld [vmem:[%s1756_s20] sm:$0xff] }
 0x3d9   : > { %1093 = vst [vmem:[%s1063_s18] sm:$0xff] %v1092_v25  ;;  %1128 = vst [vmem:[%s1098_s26] sm:$0xff] %v1127_v26  ;;  %s1133_s27 = scalar_lea.vmem %s2005_s8, %s1530_s29  ;;  %s1168_s14 = scalar_lea.vmem %s2006_s9, %s1530_s29 }
 0x3da   : > { %1163 = vst [vmem:[%s1133_s27] sm:$0xff] %v1162_v27  ;;  %1198 = vst [vmem:[%s1168_s14] sm:$0xff] %v1197_v28 }
 0x3db PF: > { %s2012_s17 = sld [smem:[#allocation25_spill]]  ;;  %p13_p13 = scmp.ge.s32.totalorder %s1707_s13, 6  }
 0x3dc   : > { %s2013_s30 = smov %s1621_s10  ;;  %s2015_s11 = smov %s1707_s13 }
 0x3dd   :  { %15 = sbr.rel (!%p13_p13) target bundleno = 2 (0x2), region = 516 }
 0x3e1   : > { %s2014_s10 = smov %s2012_s17 }

// kernel: _lambda_.4
= control target key start
LH: loop header
LB: loop body
LE: loop exit
PB: predicated region body
PF: predicated region fallthrough
CT: control target
= control target key end

     0   :  { %vm23_vm0 = vcmask 523264   ;;  %v574_v2 = vmov 0.0   ;;  %v33_v3 = vlaneseq  ;;  %s575_s23 = smov 56   ;;  %s576_s24 = smov 40   ;;  %vm38_vm3 = vcmask 64512   ;;  %s728_s0 = inlined_call_operand.vmem [shape: f32[8,8,8], index: 0, kind: input, shape index: {}]   ;;  %s729_s1 = inlined_call_operand.vmem [shape: f32[8,8], index: 1, kind: input, shape index: {}]   ;;  %s730_s2 = inlined_call_operand.vmem [shape: f32[64,64], index: 2, kind: input, shape index: {}]   ;;  %s731_s3 = inlined_call_operand.vmem [shape: f32[4,16,16], index: 3, kind: output, shape index: {}]  }
   0x1   :  { %v14_v0 = vld [vmem:[%s729_s1] sm:$0xff]  ;;  %31 = vst.msk [vmem:[#allocation2 + $0x38] sm:$0xff] %vm23_vm0, %v574_v2  ;;  %24 = vst.msk [vmem:[#allocation2] sm:$0xff] %vm23_vm0, %v574_v2  ;;  %v448_v15 = vld [vmem:[%s728_s0 + $0x38] sm:$0xff]  ;;  %s577_s29 = smov 48   ;;  %s578_s30 = smov 32  }
   0x2   :  { %v15_v1 = vmax.f32 %v14_v0, 0.0001  ;;  %25 = vst.msk [vmem:[#allocation2 + $0x8] sm:$0xff] %vm23_vm0, %v574_v2  ;;  %26 = vst.msk [vmem:[#allocation2 + $0x10] sm:$0xff] %vm23_vm0, %v574_v2  ;;  %v34_v4 = vshrl.u32 %v33_v3, 7  ;;  %v446_v16 = vld [vmem:[%s728_s0 + $0x28] sm:$0xff] }
   0x3   :  { %27 = vst.msk [vmem:[#allocation2 + $0x18] sm:$0xff] %vm23_vm0, %v574_v2  ;;  %28 = vst.msk [vmem:[#allocation2 + $0x20] sm:$0xff] %vm23_vm0, %v574_v2  ;;  %v32_v19 = vld [vmem:[%s728_s0] sm:$0xff]  ;;  %v447_v24 = vld [vmem:[%s728_s0 + $0x30] sm:$0xff]  ;;  %s579_s6 = smov 24   ;;  %s580_s7 = smov 16  }
   0x4   :  { %572 = vrsqrt.f32 %v15_v1  ;;  %29 = vst.msk [vmem:[#allocation2 + $0x28] sm:$0xff] %vm23_vm0, %v574_v2  ;;  %30 = vst.msk [vmem:[#allocation2 + $0x30] sm:$0xff] %vm23_vm0, %v574_v2  ;;  %vm18_vm1 = vcmp.eq.f32.partialorder %v15_v1, inf  ;;  %vm20_vm2 = vcmp.eq.f32.partialorder %v15_v1, 0.0  ;;  %v21_v6 = vand.u32 2147483648, %v15_v1  ;;  %v445_v25 = vld [vmem:[%s728_s0 + $0x20] sm:$0xff] }
   0x5   :  { %v35_v7 = vsub.s32 0, %v34_v4  ;;  %v122_v9 = vsub.s32 7, %v34_v4  ;;  %v109_v10 = vsub.s32 6, %v34_v4  ;;  %v96_v11 = vsub.s32 5, %v34_v4  ;;  %v444_v35 = vld [vmem:[%s728_s0 + $0x18] sm:$0xff]  ;;  %v443_v36 = vld [vmem:[%s728_s0 + $0x10] sm:$0xff] }
   0x6   :  { %v83_v12 = vsub.s32 4, %v34_v4  ;;  %v70_v17 = vsub.s32 3, %v34_v4  ;;  %v57_v18 = vsub.s32 2, %v34_v4  ;;  %v44_v34 = vsub.s32 1, %v34_v4  ;;  %v442_v40 = vld [vmem:[%s728_s0 + $0x8] sm:$0xff]  ;;  %v131_v42 = vld [vmem:[%s730_s2] sm:$0xff] }
   0x7   :  { %s581_s10 = smov 8   ;;  %521 = vmatprep.mubr.msk.f32.mxu0 %vm23_vm0, %v131_v42  ;;  %vm129_vm4 = vcmask 523712   ;;  %vm103_vm5 = vcmask 392512   ;;  %vm116_vm6 = vcmask 458112   ;;  %vm90_vm7 = vcmask 326912   ;;  %v132_v58 = vld [vmem:[%s730_s2 + $0x8] sm:$0xff] }
   0x8   :  { %vm77_vm8 = vcmask 261312   ;;  %vm64_vm9 = vcmask 195712   ;;  %vm51_vm10 = vcmask 130112   ;;  %v133_v59 = vld [vmem:[%s730_s2 + $0x10] sm:$0xff]  ;;  %v134_v60 = vld [vmem:[%s730_s2 + $0x18] sm:$0xff]  ;;  %v135_v61 = vld [vmem:[%s730_s2 + $0x20] sm:$0xff] }
   0x9   :  { %v136_v62 = vld [vmem:[%s730_s2 + $0x28] sm:$0xff]  ;;  %v137_v63 = vld [vmem:[%s730_s2 + $0x30] sm:$0xff]  ;;  %v138_v0 = vld [vmem:[%s730_s2 + $0x38] sm:$0xff]  ;;  %vm429_vm11 = vcmask 130048   ;;  %s582_s26 = smov 112   ;;  %s583_s27 = smov 96  }
   0xa   :  { %s584_s28 = smov 80  }
  0x11   :  { %v573_v5 = vpop.eup %572 }
  0x12   :  { %v17_v8 = vmul.f32 %v573_v5, %v15_v1 }
  0x14   :  { %v19_v13 = vsel %vm18_vm1, %v15_v1, %v17_v8 }
  0x15   :  { %v22_v14 = vsel %vm20_vm2, %v21_v6, %v19_v13 }
  0x16   :  { %v123_v20 = vrot.slane %v22_v14, %v122_v9  ;;  %v36_v21 = vrot.slane %v22_v14, %v35_v7  ;;  %v110_v22 = vrot.slane %v22_v14, %v109_v10  ;;  %v97_v23 = vrot.slane %v22_v14, %v96_v11 }
  0x17   :  { %v84_v26 = vrot.slane %v22_v14, %v83_v12  ;;  %v71_v30 = vrot.slane %v22_v14, %v70_v17  ;;  %v58_v33 = vrot.slane %v22_v14, %v57_v18  ;;  %v45_v39 = vrot.slane %v22_v14, %v44_v34 }
  0x18   :  { %v124_v27 = vmul.f32 %v448_v15, %v123_v20  ;;  %v98_v28 = vmul.f32 %v446_v16, %v97_v23  ;;  %v37_v29 = vmul.f32 %v36_v21, %v32_v19  ;;  %v111_v31 = vmul.f32 %v447_v24, %v110_v22 }
  0x19   :  { %v85_v32 = vmul.f32 %v445_v25, %v84_v26  ;;  %v72_v37 = vmul.f32 %v444_v35, %v71_v30  ;;  %v59_v38 = vmul.f32 %v443_v36, %v58_v33  ;;  %v46_v41 = vmul.f32 %v442_v40, %v45_v39 }
  0x1a   :  { %126 = vrot.lane.b32.xlu0 %v124_v27, %s575_s23  ;;  %100 = vrot.lane.b32.xlu1 %v98_v28, %s576_s24  ;;  %39 = vst.msk [vmem:[#allocation2] sm:$0xff] %vm38_vm3, %v37_v29 }
  0x1e   :  { %113 = vrot.lane.b32.xlu0 %v111_v31, %s577_s29  ;;  %87 = vrot.lane.b32.xlu1 %v85_v32, %s578_s30 }
  0x21   :  { %v139_v57 = vld [vmem:[#allocation2] sm:$0xff] }
  0x22   :  { %74 = vrot.lane.b32.xlu0 %v72_v37, %s579_s6  ;;  %61 = vrot.lane.b32.xlu1 %v59_v38, %s580_s7 }
  0x26   :  { %48 = vrot.lane.b32.xlu0 %v46_v41, %s581_s10 }
  0x8c   :  { %v127_v43 = vpop.permute.xlu0 %126  ;;  %v101_v44 = vpop.permute.xlu1 %100 }
  0x8d   :  { %130 = vst.msk [vmem:[#allocation2 + $0x38] sm:$0xff] %vm129_vm4, %v127_v43 }
  0x8e   :  { %104 = vst.msk [vmem:[#allocation2 + $0x28] sm:$0xff] %vm103_vm5, %v101_v44 }
  0x90   :  { %v114_v45 = vpop.permute.xlu0 %113  ;;  %v88_v46 = vpop.permute.xlu1 %87 }
  0x91   :  { %117 = vst.msk [vmem:[#allocation2 + $0x30] sm:$0xff] %vm116_vm6, %v114_v45 }
  0x92   :  { %91 = vst.msk [vmem:[#allocation2 + $0x20] sm:$0xff] %vm90_vm7, %v88_v46 }
  0x94   :  { %v146_v47 = vld [vmem:[#allocation2 + $0x38] sm:$0xff]  ;;  %v75_v48 = vpop.permute.xlu0 %74  ;;  %v62_v49 = vpop.permute.xlu1 %61 }
  0x95   :  { %505 = vmatprep.subr.mxu0 %v146_v47  ;;  %78 = vst.msk [vmem:[#allocation2 + $0x18] sm:$0xff] %vm77_vm8, %v75_v48  ;;  %v144_v52 = vld [vmem:[#allocation2 + $0x28] sm:$0xff] }
  0x96   :  { %65 = vst.msk [vmem:[#allocation2 + $0x10] sm:$0xff] %vm64_vm9, %v62_v49  ;;  %506 = vmatpush3.msra.mxu0 %v146_v47 }
  0x98   :  { %v145_v50 = vld [vmem:[#allocation2 + $0x30] sm:$0xff]  ;;  %v49_v51 = vpop.permute.xlu0 %48 }
  0x99   :  { %507 = vmatprep.subr.mxu0 %v145_v50  ;;  %52 = vst.msk [vmem:[#allocation2 + $0x8] sm:$0xff] %vm51_vm10, %v49_v51  ;;  %v143_v53 = vld [vmem:[#allocation2 + $0x20] sm:$0xff] }
  0x9a   :  { %508 = vmatpush3.msra.mxu0 %v145_v50 }
  0x9b   :  { %509 = vmatprep.subr.mxu0 %v144_v52 }
  0x9c   :  { %510 = vmatpush3.msra.mxu0 %v144_v52  ;;  %v142_v54 = vld [vmem:[#allocation2 + $0x18] sm:$0xff] }
  0x9d   :  { %511 = vmatprep.subr.mxu0 %v143_v53  ;;  %v141_v55 = vld [vmem:[#allocation2 + $0x10] sm:$0xff] }
  0x9e   :  { %512 = vmatpush3.msra.mxu0 %v143_v53 }
  0x9f   :  { %513 = vmatprep.subr.mxu0 %v142_v54 }
  0xa0   :  { %514 = vmatpush3.msra.mxu0 %v142_v54  ;;  %v140_v56 = vld [vmem:[#allocation2 + $0x8] sm:$0xff] }
  0xa1   :  { %515 = vmatprep.subr.mxu0 %v141_v55 }
  0xa2   :  { %516 = vmatpush3.msra.mxu0 %v141_v55 }
  0xa3   :  { %517 = vmatprep.subr.mxu0 %v140_v56 }
  0xa4   :  { %518 = vmatpush3.msra.mxu0 %v140_v56 }
  0xa5   :  { %519 = vmatprep.subr.mxu0 %v139_v57 }
  0xa6   :  { %520 = vmatpush3.msra.mxu0 %v139_v57 }
  0xa7   :  { %522 = vmatmul.mubr.msk.f32.vlgmr.msra.gmra.mxu0 %vm23_vm0, %v132_v58 }
  0xa8   :  { %524 = vmatprep.mubr.msk.f32.mxu0 %vm23_vm0, %v133_v59 }
  0xab   :  { %525 = vmatmul.mubr.msk.f32.gmra.mxu0 %vm23_vm0, %v134_v60 }
  0xac   :  { %527 = vmatprep.mubr.msk.f32.mxu0 %vm23_vm0, %v135_v61 }
  0xaf   :  { %528 = vmatmul.mubr.msk.f32.gmra.mxu0 %vm23_vm0, %v136_v62 }
  0xb0   :  { %530 = vmatprep.mubr.msk.f32.mxu0 %vm23_vm0, %v137_v63 }
  0xb3   :  { %531 = vmatmul.mubr.msk.f32.gmra.mxu0 %vm23_vm0, %v138_v0 }
 0x167   :  { %v523_v1 = vpop.f32.mrf.mxu0 }
 0x169   :  { %v237_v2 = vpop.f32.mrf.mxu0 }
 0x16a   :  { %549 = vmatprep.mubr.msk.f32.mxu1 %vm23_vm0, %v237_v2 }
 0x16b   :  { %v526_v3 = vpop.f32.mrf.mxu0 }
 0x16d   :  { %v247_v4 = vpop.f32.mrf.mxu0 }
 0x16f   :  { %v529_v5 = vpop.f32.mrf.mxu0 }
 0x171   :  { %v257_v6 = vpop.f32.mrf.mxu0 }
 0x173   :  { %v532_v7 = vpop.f32.mrf.mxu0 }
 0x174   :  { %533 = vmatprep.subr.msk.mxu1 %vm23_vm0, %v532_v7 }
 0x175   :  { %v267_v8 = vpop.f32.mrf.mxu0  ;;  %534 = vmatpush3.xpose.msk.msra.mxu1 %vm23_vm0, %v532_v7 }
 0x176   :  { %535 = vmatprep.subr.msk.mxu1 %vm23_vm0, %v267_v8 }
 0x179   :  { %536 = vmatpush3.xpose.msk.msra.mxu1 %vm23_vm0, %v267_v8 }
 0x17a   :  { %537 = vmatprep.subr.msk.mxu1 %vm23_vm0, %v529_v5 }
 0x17d   :  { %538 = vmatpush3.xpose.msk.msra.mxu1 %vm23_vm0, %v529_v5 }
 0x17e   :  { %539 = vmatprep.subr.msk.mxu1 %vm23_vm0, %v257_v6 }
 0x181   :  { %540 = vmatpush3.xpose.msk.msra.mxu1 %vm23_vm0, %v257_v6 }
 0x182   :  { %541 = vmatprep.subr.msk.mxu1 %vm23_vm0, %v526_v3 }
 0x185   :  { %542 = vmatpush3.xpose.msk.msra.mxu1 %vm23_vm0, %v526_v3 }
 0x186   :  { %543 = vmatprep.subr.msk.mxu1 %vm23_vm0, %v247_v4 }
 0x189   :  { %544 = vmatpush3.xpose.msk.msra.mxu1 %vm23_vm0, %v247_v4 }
 0x18a   :  { %545 = vmatprep.subr.msk.mxu1 %vm23_vm0, %v523_v1 }
 0x18d   :  { %546 = vmatpush3.xpose.msk.msra.mxu1 %vm23_vm0, %v523_v1 }
 0x18e   :  { %547 = vmatprep.subr.msk.mxu1 %vm23_vm0, %v237_v2 }
 0x191   :  { %548 = vmatpush3.xpose.msk.msra.mxu1 %vm23_vm0, %v237_v2 }
 0x194   :  { %550 = vmatmul.mubr.msk.f32.vlgmr.msra.gmra.mxu1 %vm23_vm0, %v523_v1 }
 0x195   :  { %552 = vmatprep.mubr.msk.f32.mxu1 %vm23_vm0, %v247_v4 }
 0x198   :  { %553 = vmatmul.mubr.msk.f32.gmra.mxu1 %vm23_vm0, %v526_v3 }
 0x199   :  { %555 = vmatprep.mubr.msk.f32.mxu1 %vm23_vm0, %v257_v6 }
 0x19c   :  { %556 = vmatmul.mubr.msk.f32.gmra.mxu1 %vm23_vm0, %v529_v5 }
 0x19d   :  { %558 = vmatprep.mubr.msk.f32.mxu1 %vm23_vm0, %v267_v8 }
 0x1a0   :  { %559 = vmatmul.mubr.msk.f32.gmra.mxu1 %vm23_vm0, %v532_v7 }
 0x254   :  { %v551_v9 = vpop.f32.mrf.mxu1 }
 0x255   :  { %431 = vst.msk [vmem:[%s731_s3 + $0x8] sm:$0xff] %vm429_vm11, %v551_v9 }
 0x256   :  { %v366_v10 = vpop.f32.mrf.mxu1 }
 0x257   :  { %430 = vst.msk [vmem:[%s731_s3] sm:$0xff] %vm429_vm11, %v366_v10 }
 0x258   :  { %v554_v11 = vpop.f32.mrf.mxu1 }
 0x259   :  { %409 = vrot.lane.b32.xlu0 %v554_v11, %s582_s26 }
 0x25a   :  { %v376_v12 = vpop.f32.mrf.mxu1 }
 0x25b   :  { %407 = vrot.lane.b32.xlu1 %v376_v12, %s582_s26 }
 0x25c   :  { %v557_v13 = vpop.f32.mrf.mxu1 }
 0x25d   :  { %417 = vrot.lane.b32.xlu0 %v557_v13, %s583_s27 }
 0x25e   :  { %v386_v14 = vpop.f32.mrf.mxu1 }
 0x25f   :  { %415 = vrot.lane.b32.xlu1 %v386_v14, %s583_s27 }
 0x260   :  { %v560_v15 = vpop.f32.mrf.mxu1 }
 0x261   :  { %425 = vrot.lane.b32.xlu0 %v560_v15, %s584_s28 }
 0x262   :  { %v396_v16 = vpop.f32.mrf.mxu1 }
 0x263   :  { %423 = vrot.lane.b32.xlu1 %v396_v16, %s584_s28 }
 0x2cb   :  { %v410_v17 = vpop.permute.xlu0 %409 }
 0x2cc   :  { %433 = vst.msk [vmem:[%s731_s3 + $0x18] sm:$0xff] %vm429_vm11, %v410_v17 }
 0x2cd   :  { %v408_v18 = vpop.permute.xlu1 %407 }
 0x2ce   :  { %432 = vst.msk [vmem:[%s731_s3 + $0x10] sm:$0xff] %vm429_vm11, %v408_v18 }
 0x2cf   :  { %v418_v19 = vpop.permute.xlu0 %417 }
 0x2d0   :  { %435 = vst.msk [vmem:[%s731_s3 + $0x28] sm:$0xff] %vm429_vm11, %v418_v19 }
 0x2d1   :  { %v416_v20 = vpop.permute.xlu1 %415 }
 0x2d2   :  { %434 = vst.msk [vmem:[%s731_s3 + $0x20] sm:$0xff] %vm429_vm11, %v416_v20 }
 0x2d3   :  { %v426_v21 = vpop.permute.xlu0 %425 }
 0x2d4   :  { %437 = vst.msk [vmem:[%s731_s3 + $0x38] sm:$0xff] %vm429_vm11, %v426_v21 }
 0x2d5   :  { %v424_v22 = vpop.permute.xlu1 %423 }
 0x2d6   :  { %436 = vst.msk [vmem:[%s731_s3 + $0x30] sm:$0xff] %vm429_vm11, %v424_v22 }

// kernel: _lambda_.3
= control target key start
LH: loop header
LB: loop body
LE: loop exit
PB: predicated region body
PF: predicated region fallthrough
CT: control target
= control target key end

     0   :  { %s562_s16 = smov 48   ;;  %s563_s17 = smov 32   ;;  %vm14_vm0 = vcmask 523264   ;;  %v564_v4 = vmov 0.0   ;;  %vm25_vm1 = vcmask 130048   ;;  %vm67_vm2 = vcmask 523648   ;;  %s721_s0 = inlined_call_operand.vmem [shape: f32[4,16,16], index: 0, kind: input, shape index: {}]   ;;  %s722_s1 = inlined_call_operand.vmem [shape: f32[64,64], index: 1, kind: input, shape index: {}]   ;;  %s723_s2 = inlined_call_operand.vmem [shape: f32[64,64], index: 2, kind: input, shape index: {}]   ;;  %s724_s3 = inlined_call_operand.vmem [shape: f32[8,8,8], index: 3, kind: output, shape index: {}]  }
   0x1   :  { %v446_v0 = vld [vmem:[%s721_s0 + $0x38] sm:$0xff]  ;;  %v444_v1 = vld [vmem:[%s721_s0 + $0x28] sm:$0xff]  ;;  %v445_v2 = vld [vmem:[%s721_s0 + $0x30] sm:$0xff]  ;;  %22 = vst.msk [vmem:[#allocation2 + $0x38] sm:$0xff] %vm14_vm0, %v564_v4  ;;  %s565_s30 = smov 16   ;;  %vm53_vm3 = vcmask 392448  }
   0x2   :  { %63 = vrot.lane.b32.xlu0 %v446_v0, %s562_s16  ;;  %49 = vrot.lane.b32.xlu1 %v444_v1, %s563_s17  ;;  %v443_v3 = vld [vmem:[%s721_s0 + $0x20] sm:$0xff]  ;;  %15 = vst.msk [vmem:[#allocation2] sm:$0xff] %vm14_vm0, %v564_v4  ;;  %16 = vst.msk [vmem:[#allocation2 + $0x8] sm:$0xff] %vm14_vm0, %v564_v4  ;;  %v24_v5 = vld [vmem:[%s721_s0 + $0x8] sm:$0xff]  ;;  %vm39_vm4 = vcmask 261248   ;;  %vm428_vm5 = vcmask 64512  }
   0x3   :  { %17 = vst.msk [vmem:[#allocation2 + $0x10] sm:$0xff] %vm14_vm0, %v564_v4  ;;  %18 = vst.msk [vmem:[#allocation2 + $0x18] sm:$0xff] %vm14_vm0, %v564_v4  ;;  %v23_v6 = vld [vmem:[%s721_s0] sm:$0xff]  ;;  %v442_v7 = vld [vmem:[%s721_s0 + $0x18] sm:$0xff]  ;;  %s566_s8 = smov 120   ;;  %s567_s9 = smov 112  }
   0x4   :  { %19 = vst.msk [vmem:[#allocation2 + $0x20] sm:$0xff] %vm14_vm0, %v564_v4  ;;  %20 = vst.msk [vmem:[#allocation2 + $0x28] sm:$0xff] %vm14_vm0, %v564_v4  ;;  %v441_v8 = vld [vmem:[%s721_s0 + $0x10] sm:$0xff]  ;;  %v70_v9 = vld [vmem:[%s722_s1] sm:$0xff]  ;;  %s568_s0 = smov 104   ;;  %s569_s10 = smov 96  }
   0x5   :  { %21 = vst.msk [vmem:[#allocation2 + $0x30] sm:$0xff] %vm14_vm0, %v564_v4  ;;  %511 = vmatprep.mubr.msk.f32.mxu0 %vm14_vm0, %v70_v9  ;;  %v222_v10 = vld [vmem:[%s723_s2 + $0x38] sm:$0xff]  ;;  %v221_v11 = vld [vmem:[%s723_s2 + $0x30] sm:$0xff]  ;;  %v220_v12 = vld [vmem:[%s723_s2 + $0x28] sm:$0xff]  ;;  %s570_s11 = smov 88   ;;  %s571_s12 = smov 80  }
   0x6   :  { %27 = vst.msk [vmem:[#allocation2 + $0x8] sm:$0xff] %vm25_vm1, %v24_v5  ;;  %26 = vst.msk [vmem:[#allocation2] sm:$0xff] %vm25_vm1, %v23_v6  ;;  %61 = vrot.lane.b32.xlu0 %v445_v2, %s562_s16  ;;  %47 = vrot.lane.b32.xlu1 %v443_v3, %s563_s17  ;;  %v219_v13 = vld [vmem:[%s723_s2 + $0x20] sm:$0xff]  ;;  %v218_v14 = vld [vmem:[%s723_s2 + $0x18] sm:$0xff]  ;;  %s572_s13 = smov 72  }
   0x7   :  { %523 = vmatprep.subr.mxu1 %v222_v10  ;;  %v217_v15 = vld [vmem:[%s723_s2 + $0x10] sm:$0xff]  ;;  %v71_v30 = vld [vmem:[%s722_s1 + $0x8] sm:$0xff]  ;;  %v73_v32 = vld [vmem:[%s722_s1 + $0x18] sm:$0xff] }
   0x8   :  { %524 = vmatpush3.msra.mxu1 %v222_v10  ;;  %v72_v31 = vld [vmem:[%s722_s1 + $0x10] sm:$0xff]  ;;  %v74_v33 = vld [vmem:[%s722_s1 + $0x20] sm:$0xff]  ;;  %v75_v34 = vld [vmem:[%s722_s1 + $0x28] sm:$0xff] }
   0x9   :  { %525 = vmatprep.subr.mxu1 %v221_v11  ;;  %v76_v35 = vld [vmem:[%s722_s1 + $0x30] sm:$0xff]  ;;  %v77_v36 = vld [vmem:[%s722_s1 + $0x38] sm:$0xff]  ;;  %v216_v37 = vld [vmem:[%s723_s2 + $0x8] sm:$0xff] }
   0xa   :  { %35 = vrot.lane.b32.xlu0 %v442_v7, %s565_s30  ;;  %33 = vrot.lane.b32.xlu1 %v441_v8, %s565_s30  ;;  %v215_v38 = vld [vmem:[%s723_s2] sm:$0xff] }
   0xb   :  { %526 = vmatpush3.msra.mxu1 %v221_v11 }
   0xc   :  { %527 = vmatprep.subr.mxu1 %v220_v12 }
   0xd   :  { %528 = vmatpush3.msra.mxu1 %v220_v12  ;;  %v79_v28 = vld [vmem:[#allocation2 + $0x8] sm:$0xff]  ;;  %v78_v29 = vld [vmem:[#allocation2] sm:$0xff] }
   0xe   :  { %529 = vmatprep.subr.mxu1 %v219_v13 }
   0xf   :  { %530 = vmatpush3.msra.mxu1 %v219_v13 }
  0x10   :  { %531 = vmatprep.subr.mxu1 %v218_v14 }
  0x11   :  { %532 = vmatpush3.msra.mxu1 %v218_v14 }
  0x12   :  { %533 = vmatprep.subr.mxu1 %v217_v15 }
  0x13   :  { %534 = vmatpush3.msra.mxu1 %v217_v15 }
  0x14   :  { %535 = vmatprep.subr.mxu1 %v216_v37 }
  0x15   :  { %536 = vmatpush3.msra.mxu1 %v216_v37 }
  0x16   :  { %537 = vmatprep.subr.mxu1 %v215_v38 }
  0x17   :  { %538 = vmatpush3.msra.mxu1 %v215_v38 }
  0x74   :  { %v64_v16 = vpop.permute.xlu0 %63  ;;  %v50_v17 = vpop.permute.xlu1 %49 }
  0x75   :  { %69 = vst.msk [vmem:[#allocation2 + $0x38] sm:$0xff] %vm67_vm2, %v64_v16 }
  0x76   :  { %55 = vst.msk [vmem:[#allocation2 + $0x28] sm:$0xff] %vm53_vm3, %v50_v17 }
  0x78   :  { %v62_v18 = vpop.permute.xlu0 %61  ;;  %v48_v19 = vpop.permute.xlu1 %47 }
  0x79   :  { %68 = vst.msk [vmem:[#allocation2 + $0x30] sm:$0xff] %vm67_vm2, %v62_v18 }
  0x7a   :  { %54 = vst.msk [vmem:[#allocation2 + $0x20] sm:$0xff] %vm53_vm3, %v48_v19 }
  0x7c   :  { %v85_v20 = vld [vmem:[#allocation2 + $0x38] sm:$0xff]  ;;  %v36_v21 = vpop.permute.xlu0 %35  ;;  %v34_v22 = vpop.permute.xlu1 %33 }
  0x7d   :  { %495 = vmatprep.subr.mxu0 %v85_v20  ;;  %41 = vst.msk [vmem:[#allocation2 + $0x18] sm:$0xff] %vm39_vm4, %v36_v21  ;;  %40 = vst.msk [vmem:[#allocation2 + $0x10] sm:$0xff] %vm39_vm4, %v34_v22  ;;  %v83_v24 = vld [vmem:[#allocation2 + $0x28] sm:$0xff] }
  0x7e   :  { %496 = vmatpush3.msra.mxu0 %v85_v20 }
  0x80   :  { %v84_v23 = vld [vmem:[#allocation2 + $0x30] sm:$0xff] }
  0x81   :  { %497 = vmatprep.subr.mxu0 %v84_v23  ;;  %v82_v25 = vld [vmem:[#allocation2 + $0x20] sm:$0xff] }
  0x82   :  { %498 = vmatpush3.msra.mxu0 %v84_v23 }
  0x83   :  { %499 = vmatprep.subr.mxu0 %v83_v24 }
  0x84   :  { %500 = vmatpush3.msra.mxu0 %v83_v24  ;;  %v81_v26 = vld [vmem:[#allocation2 + $0x18] sm:$0xff]  ;;  %v80_v27 = vld [vmem:[#allocation2 + $0x10] sm:$0xff] }
  0x85   :  { %501 = vmatprep.subr.mxu0 %v82_v25 }
  0x86   :  { %502 = vmatpush3.msra.mxu0 %v82_v25 }
  0x87   :  { %503 = vmatprep.subr.mxu0 %v81_v26 }
  0x88   :  { %504 = vmatpush3.msra.mxu0 %v81_v26 }
  0x89   :  { %505 = vmatprep.subr.mxu0 %v80_v27 }
  0x8a   :  { %506 = vmatpush3.msra.mxu0 %v80_v27 }
  0x8b   :  { %507 = vmatprep.subr.mxu0 %v79_v28 }
  0x8c   :  { %508 = vmatpush3.msra.mxu0 %v79_v28 }
  0x8d   :  { %509 = vmatprep.subr.mxu0 %v78_v29 }
  0x8e   :  { %510 = vmatpush3.msra.mxu0 %v78_v29 }
  0x8f   :  { %512 = vmatmul.mubr.msk.f32.vlgmr.msra.gmra.mxu0 %vm14_vm0, %v71_v30 }
  0x90   :  { %514 = vmatprep.mubr.msk.f32.mxu0 %vm14_vm0, %v72_v31 }
  0x93   :  { %515 = vmatmul.mubr.msk.f32.gmra.mxu0 %vm14_vm0, %v73_v32 }
  0x94   :  { %517 = vmatprep.mubr.msk.f32.mxu0 %vm14_vm0, %v74_v33 }
  0x97   :  { %518 = vmatmul.mubr.msk.f32.gmra.mxu0 %vm14_vm0, %v75_v34 }
  0x98   :  { %520 = vmatprep.mubr.msk.f32.mxu0 %vm14_vm0, %v76_v35 }
  0x9b   :  { %521 = vmatmul.mubr.msk.f32.gmra.mxu0 %vm14_vm0, %v77_v36 }
 0x14f   :  { %v513_v39 = vpop.f32.mrf.mxu0 }
 0x151   :  { %v176_v40 = vpop.f32.mrf.mxu0 }
 0x152   :  { %539 = vmatprep.mubr.msk.f32.mxu1 %vm14_vm0, %v176_v40 }
 0x153   :  { %v516_v41 = vpop.f32.mrf.mxu0  ;;  %540 = vmatmul.mubr.msk.f32.vlgmr.msra.gmra.mxu1 %vm14_vm0, %v513_v39 }
 0x155   :  { %v186_v42 = vpop.f32.mrf.mxu0 }
 0x156   :  { %542 = vmatprep.mubr.msk.f32.mxu1 %vm14_vm0, %v186_v42 }
 0x157   :  { %543 = vmatmul.mubr.msk.f32.gmra.mxu1 %vm14_vm0, %v516_v41  ;;  %v519_v43 = vpop.f32.mrf.mxu0 }
 0x159   :  { %v196_v44 = vpop.f32.mrf.mxu0 }
 0x15a   :  { %545 = vmatprep.mubr.msk.f32.mxu1 %vm14_vm0, %v196_v44 }
 0x15b   :  { %546 = vmatmul.mubr.msk.f32.gmra.mxu1 %vm14_vm0, %v519_v43  ;;  %v522_v45 = vpop.f32.mrf.mxu0 }
 0x15d   :  { %v206_v46 = vpop.f32.mrf.mxu0 }
 0x15e   :  { %548 = vmatprep.mubr.msk.f32.mxu1 %vm14_vm0, %v206_v46 }
 0x15f   :  { %549 = vmatmul.mubr.msk.f32.gmra.mxu1 %vm14_vm0, %v522_v45 }
 0x213   :  { %v541_v47 = vpop.f32.mrf.mxu1 }
 0x215   :  { %v313_v48 = vpop.f32.mrf.mxu1 }
 0x216   :  { %352 = vxpose.xlu0.b32.start [1/8] (short) (narrow) %v313_v48, 64 }
 0x217   :  { %v544_v49 = vpop.f32.mrf.mxu1 }
 0x219   :  { %v323_v50 = vpop.f32.mrf.mxu1 }
 0x21a   :  { %353 = vxpose.xlu0.b32.cont [2/8] (short) (narrow) %v541_v47, 64 }
 0x21b   :  { %v547_v51 = vpop.f32.mrf.mxu1 }
 0x21d   :  { %v333_v52 = vpop.f32.mrf.mxu1 }
 0x21e   :  { %354 = vxpose.xlu0.b32.cont [3/8] (short) (narrow) %v323_v50, 64 }
 0x21f   :  { %v550_v53 = vpop.f32.mrf.mxu1 }
 0x221   :  { %v343_v54 = vpop.f32.mrf.mxu1 }
 0x222   :  { %355 = vxpose.xlu0.b32.cont [4/8] (short) (narrow) %v544_v49, 64 }
 0x226   :  { %356 = vxpose.xlu0.b32.cont [5/8] (short) (narrow) %v333_v52, 64 }
 0x22a   :  { %357 = vxpose.xlu0.b32.cont [6/8] (short) (narrow) %v547_v51, 64 }
 0x22e   :  { %358 = vxpose.xlu0.b32.cont [7/8] (short) (narrow) %v343_v54, 64 }
 0x232   :  { %359 = vxpose.xlu0.b32.end [8/8] (short) (narrow) %v550_v53, 64 }
 0x292   :  { %v368_v55 = vpop.trf.xlu0 }
 0x293   :  { %v384_v56 = vadd.f32 %v368_v55, %v313_v48 }
 0x295   :  { %v392_v57 = vmul.f32 0.5, %v384_v56 }
 0x296   :  { %v369_v58 = vpop.trf.xlu0 }
 0x297   :  { %429 = vst.msk [vmem:[%s724_s3] sm:$0xff] %vm428_vm5, %v392_v57  ;;  %v385_v59 = vadd.f32 %v541_v47, %v369_v58 }
 0x299   :  { %v393_v60 = vmul.f32 0.5, %v385_v59 }
 0x29a   :  { %v370_v61 = vpop.trf.xlu0 }
 0x29b   :  { %v386_v62 = vadd.f32 %v370_v61, %v323_v50  ;;  %401 = vrot.lane.b32.xlu1 %v393_v60, %s566_s8 }
 0x29d   :  { %v394_v63 = vmul.f32 0.5, %v386_v62 }
 0x29e   :  { %v371_v0 = vpop.trf.xlu0 }
 0x29f   :  { %v387_v1 = vadd.f32 %v544_v49, %v371_v0  ;;  %405 = vrot.lane.b32.xlu1 %v394_v63, %s567_s9 }
 0x2a1   :  { %v395_v2 = vmul.f32 0.5, %v387_v1 }
 0x2a2   :  { %v372_v3 = vpop.trf.xlu0 }
 0x2a3   :  { %v388_v4 = vadd.f32 %v372_v3, %v333_v52  ;;  %409 = vrot.lane.b32.xlu1 %v395_v2, %s568_s0 }
 0x2a5   :  { %v396_v5 = vmul.f32 0.5, %v388_v4 }
 0x2a6   :  { %v373_v6 = vpop.trf.xlu0 }
 0x2a7   :  { %v389_v7 = vadd.f32 %v547_v51, %v373_v6  ;;  %413 = vrot.lane.b32.xlu1 %v396_v5, %s569_s10 }
 0x2a9   :  { %v397_v8 = vmul.f32 0.5, %v389_v7 }
 0x2aa   :  { %v374_v9 = vpop.trf.xlu0 }
 0x2ab   :  { %v390_v10 = vadd.f32 %v374_v9, %v343_v54  ;;  %417 = vrot.lane.b32.xlu1 %v397_v8, %s570_s11 }
 0x2ad   :  { %v398_v11 = vmul.f32 0.5, %v390_v10 }
 0x2ae   :  { %v375_v12 = vpop.trf.xlu0 }
 0x2af   :  { %v391_v13 = vadd.f32 %v550_v53, %v375_v12  ;;  %421 = vrot.lane.b32.xlu1 %v398_v11, %s571_s12 }
 0x2b1   :  { %v399_v14 = vmul.f32 0.5, %v391_v13 }
 0x2b3   :  { %425 = vrot.lane.b32.xlu1 %v399_v14, %s572_s13 }
 0x30d   :  { %v402_v15 = vpop.permute.xlu1 %401 }
 0x30e   :  { %430 = vst.msk [vmem:[%s724_s3 + $0x8] sm:$0xff] %vm428_vm5, %v402_v15 }
 0x311   :  { %v406_v16 = vpop.permute.xlu1 %405 }
 0x312   :  { %431 = vst.msk [vmem:[%s724_s3 + $0x10] sm:$0xff] %vm428_vm5, %v406_v16 }
 0x315   :  { %v410_v17 = vpop.permute.xlu1 %409 }
 0x316   :  { %432 = vst.msk [vmem:[%s724_s3 + $0x18] sm:$0xff] %vm428_vm5, %v410_v17 }
 0x319   :  { %v414_v18 = vpop.permute.xlu1 %413 }
 0x31a   :  { %433 = vst.msk [vmem:[%s724_s3 + $0x20] sm:$0xff] %vm428_vm5, %v414_v18 }
 0x31d   :  { %v418_v19 = vpop.permute.xlu1 %417 }
 0x31e   :  { %434 = vst.msk [vmem:[%s724_s3 + $0x28] sm:$0xff] %vm428_vm5, %v418_v19 }
 0x321   :  { %v422_v20 = vpop.permute.xlu1 %421 }
 0x322   :  { %435 = vst.msk [vmem:[%s724_s3 + $0x30] sm:$0xff] %vm428_vm5, %v422_v20 }
 0x325   :  { %v426_v21 = vpop.permute.xlu1 %425 }
 0x326   :  { %436 = vst.msk [vmem:[%s724_s3 + $0x38] sm:$0xff] %vm428_vm5, %v426_v21 }

// kernel: _lambda_.5
= control target key start
LH: loop header
LB: loop body
LE: loop exit
PB: predicated region body
PF: predicated region fallthrough
CT: control target
= control target key end

     0   :  { %s578_s0 = inlined_call_operand.vmem [shape: f32[4,16,16], index: 0, kind: input, shape index: {}]   ;;  %s579_s1 = inlined_call_operand.vmem [shape: f32[4,16], index: 1, kind: input, shape index: {}]   ;;  %s580_s2 = inlined_call_operand.hbm [shape: f32[4,16,16], index: 2, kind: output, shape index: {}]  }
   0x1   :  { %v12_v0 = vld [vmem:[%s579_s1] sm:$0xf] }
   0x2   :  { %v13_v1 = vmax.f32 %v12_v0, 0.0001 }
   0x4   :  { %474 = vrsqrt.f32 %v13_v1 }
   0x5   :  { %7 = vsyncpa [#allocation3], 0  ;;  %v23_v2 = vlaneseq  ;;  %vm16_vm0 = vcmp.eq.f32.partialorder %v13_v1, inf  ;;  %v19_v5 = vand.u32 2147483648, %v13_v1  ;;  %vm18_vm1 = vcmp.eq.f32.partialorder %v13_v1, 0.0  ;;  %v22_v12 = vld [vmem:[%s578_s0 + $0x8] sm:$0xff] }
   0x6   :  { %v410_v14 = vld [vmem:[%s578_s0 + $0x18] sm:$0xff]  ;;  %v21_v15 = vld [vmem:[%s578_s0] sm:$0xff]  ;;  %v409_v16 = vld [vmem:[%s578_s0 + $0x10] sm:$0xff]  ;;  %vm29_vm2 = vcmask 130048  }
   0x7   :  { %v24_v3 = vshrl.u32 %v23_v2, 7  ;;  %v416_v25 = vld [vmem:[%s578_s0 + $0x28] sm:$0xff]  ;;  %v422_v26 = vld [vmem:[%s578_s0 + $0x38] sm:$0xff]  ;;  %v415_v29 = vld [vmem:[%s578_s0 + $0x20] sm:$0xff] }
   0x8   :  { %v421_v30 = vld [vmem:[%s578_s0 + $0x30] sm:$0xff]  ;;  %s498_s0 = smov [#allocation2]  }
   0x9   :  { %v25_v7 = vsub.s32 0, %v24_v3  ;;  %v116_v8 = vsub.s32 1, %v24_v3  ;;  %v206_v9 = vsub.s32 2, %v24_v3  ;;  %v296_v10 = vsub.s32 3, %v24_v3  ;;  %s394_s26 = sshll.u32 %s498_s0, 4  ;;  %s395_s26 = int_to_ptr.vmem [resolvable:$true] %s394_s26 }
   0xa   :  { %s476_s27 = scalar_lea.vmem %s395_s26, 1024  ;;  %p481_p1 = scmp.lt.s32.totalorder %s395_s26, %s395_s26 }
   0xb   :  { %p477_p0 = scmp.ne.s32.totalorder %s395_s26, %s476_s27  ;;  %p482_p2 = scmp.lt.s32.totalorder %s476_s27, %s476_s27 }
   0xd   :  { %p483_p3 = por %p482_p2, %p481_p1 }
   0xf   :  { %p484_p4 = pnand %p483_p3, %p477_p0 }
  0x11   :  { %v475_v4 = vpop.eup %474 }
  0x12   :  { %v15_v6 = vmul.f32 %v475_v4, %v13_v1 }
  0x14   :  { %v17_v11 = vsel %vm16_vm0, %v13_v1, %v15_v6 }
  0x15   :  { %v20_v13 = vsel %vm18_vm1, %v19_v5, %v17_v11 }
  0x16   :  { %v26_v17 = vrot.slane %v20_v13, %v25_v7  ;;  %v117_v18 = vrot.slane %v20_v13, %v116_v8  ;;  %v207_v19 = vrot.slane %v20_v13, %v206_v9  ;;  %v297_v20 = vrot.slane %v20_v13, %v296_v10 }
  0x18   :  { %v28_v21 = vmul.f32 %v26_v17, %v22_v12  ;;  %v119_v22 = vmul.f32 %v410_v14, %v117_v18  ;;  %v27_v23 = vmul.f32 %v26_v17, %v21_v15  ;;  %v118_v24 = vmul.f32 %v409_v16, %v117_v18 }
  0x19   :  { %v209_v27 = vmul.f32 %v416_v25, %v207_v19  ;;  %v299_v28 = vmul.f32 %v422_v26, %v297_v20  ;;  %v208_v31 = vmul.f32 %v415_v29, %v207_v19  ;;  %v298_v32 = vmul.f32 %v421_v30, %v297_v20 }
  0x1a   :  { %443 = vmatprep.subr.msk.mxu0 %vm29_vm2, %v28_v21  ;;  %450 = vmatprep.subr.msk.mxu1 %vm29_vm2, %v119_v22 }
  0x1b   :  { %444 = vmatpush3.xpose.msk.msra.mxu0 %vm29_vm2, %v28_v21  ;;  %451 = vmatpush3.xpose.msk.msra.mxu1 %vm29_vm2, %v119_v22 }
  0x1c   :  { %445 = vmatprep.subr.msk.mxu0 %vm29_vm2, %v27_v23  ;;  %452 = vmatprep.subr.msk.mxu1 %vm29_vm2, %v118_v24 }
  0x1d   :  { %447 = vmatprep.mubr.msk.f32.mxu0 %vm29_vm2, %v27_v23  ;;  %454 = vmatprep.mubr.msk.f32.mxu1 %vm29_vm2, %v118_v24 }
  0x1f   :  { %446 = vmatpush3.xpose.msk.msra.mxu0 %vm29_vm2, %v27_v23  ;;  %453 = vmatpush3.xpose.msk.msra.mxu1 %vm29_vm2, %v118_v24 }
  0x20   :  { %457 = vmatprep.subr.msk.mxu0 %vm29_vm2, %v209_v27  ;;  %464 = vmatprep.subr.msk.mxu1 %vm29_vm2, %v299_v28 }
  0x22   :  { %448 = vmatmul.mubr.msk.f32.vlgmr.msra.gmra.mxu0 %vm29_vm2, %v28_v21  ;;  %455 = vmatmul.mubr.msk.f32.vlgmr.msra.gmra.mxu1 %vm29_vm2, %v119_v22 }
  0x23   :  { %458 = vmatpush3.xpose.msk.msra.mxu0 %vm29_vm2, %v209_v27  ;;  %465 = vmatpush3.xpose.msk.msra.mxu1 %vm29_vm2, %v299_v28 }
  0x24   :  { %459 = vmatprep.subr.msk.mxu0 %vm29_vm2, %v208_v31  ;;  %466 = vmatprep.subr.msk.mxu1 %vm29_vm2, %v298_v32 }
  0x25   :  { %461 = vmatprep.mubr.msk.f32.mxu0 %vm29_vm2, %v208_v31  ;;  %468 = vmatprep.mubr.msk.f32.mxu1 %vm29_vm2, %v298_v32 }
  0x27   :  { %460 = vmatpush3.xpose.msk.msra.mxu0 %vm29_vm2, %v208_v31  ;;  %467 = vmatpush3.xpose.msk.msra.mxu1 %vm29_vm2, %v298_v32 }
  0x2a   :  { %462 = vmatmul.mubr.msk.f32.vlgmr.msra.gmra.mxu0 %vm29_vm2, %v209_v27  ;;  %469 = vmatmul.mubr.msk.f32.vlgmr.msra.gmra.mxu1 %vm29_vm2, %v299_v28 }
  0xe2   :  { %v449_v33 = vpop.f32.mrf.mxu0  ;;  %v456_v34 = vpop.f32.mrf.mxu1 }
  0xe3   :  { %382 = vst.msk [vmem:[#allocation2 + $0x8] sm:$0xff] %vm29_vm2, %v449_v33  ;;  %384 = vst.msk [vmem:[#allocation2 + $0x18] sm:$0xff] %vm29_vm2, %v456_v34 }
  0xe4   :  { %v102_v35 = vpop.f32.mrf.mxu0  ;;  %v192_v36 = vpop.f32.mrf.mxu1 }
  0xe5   :  { %381 = vst.msk [vmem:[#allocation2] sm:$0xff] %vm29_vm2, %v102_v35  ;;  %383 = vst.msk [vmem:[#allocation2 + $0x10] sm:$0xff] %vm29_vm2, %v192_v36 }
  0xea   :  { %v463_v37 = vpop.f32.mrf.mxu0  ;;  %v470_v38 = vpop.f32.mrf.mxu1 }
  0xeb   :  { %386 = vst.msk [vmem:[#allocation2 + $0x28] sm:$0xff] %vm29_vm2, %v463_v37  ;;  %388 = vst.msk [vmem:[#allocation2 + $0x38] sm:$0xff] %vm29_vm2, %v470_v38 }
  0xec   :  { %v282_v39 = vpop.f32.mrf.mxu0  ;;  %v372_v40 = vpop.f32.mrf.mxu1 }
  0xed   :  { %385 = vst.msk [vmem:[#allocation2 + $0x20] sm:$0xff] %vm29_vm2, %v282_v39  ;;  %387 = vst.msk [vmem:[#allocation2 + $0x30] sm:$0xff] %vm29_vm2, %v372_v40 }
  0xee   :  { %487 = shalt.err (!%p484_p4)
}
  0xef   :  { %s499_s28 = smov 128   ;;  %s500_s29 = smov 8  }
  0xf0   :  { %400 = dma.vmem_to_hbm [thread:$0]  %s395_s26, 1024, %s580_s2, [#allocation3], %s499_s28, %s499_s28, %s500_s29  }
  0xf1   :  { %496 = dma.done.wait [#allocation3], 1024  }
  0xf2   :  { %497 = vsyncadd [#allocation3], 4294966272 }
  0xf3   :  { %404 = vsyncpa [#allocation3], 1 }

</bundles_post_ra>
